<compile_context>
chip_gen: v7x
topology: tpu7x:2x2x1
jax: 0.10.0
libtpu: 0.0.40
codegen_flags: <defaults>
</compile_context>

<pallas_src>
import functools

import numpy as np
import jax
import jax.numpy as jnp
from jax.experimental import pallas as pl
from jax.experimental.pallas import tpu as pltpu


# ----------------------------------------------------------------------------
# Fused Pallas kernel: conv(im2col matmul)+SiLU -> head matmul+sigmoid ->
# YOLOv5 decode -> per-anchor split/store.
# ----------------------------------------------------------------------------
def _fused_detect_kernel(cols_ref, gx_ref, gy_ref, w1_ref, b1_ref,
                         w2_ref, b2_ref, dec_ref, sel_ref, o_ref, *, na, no):
    # cols_ref: (1, TM, 9*Cin) bf16     im2col rows, m = h*W + w
    # gx_ref/gy_ref: (TM, 1) f32        pixel x / y coordinates of each row
    # w1_ref: (9*Cin, C1) bf16, b1_ref: (1, C1) f32
    # w2_ref: (C1, na*no) bf16, b2_ref: (1, na*no) f32
    # dec_ref: (5, 1, na*no) f32        decode coeffs A, B, C, GX, GY
    # sel_ref: (na, na*no, no) f32      0/1 per-anchor column selectors
    # o_ref:  (1, na, TM, no) bf16
    x = cols_ref[0]

    # 3x3 conv (as matmul) + bias + SiLU (f32 accumulate / activation math)
    h = jnp.dot(x, w1_ref[...], preferred_element_type=jnp.float32) + b1_ref[...]
    a1 = h * jax.nn.sigmoid(h)

    # 1x1 detect-head conv + bias + sigmoid
    logits = jnp.dot(a1.astype(jnp.bfloat16), w2_ref[...],
                     preferred_element_type=jnp.float32) + b2_ref[...]
    s = jax.nn.sigmoid(logits)                                   # (TM, na*no)

    # Fused YOLOv5 decode:  y = A*s^2 + B*s + C + gx*GX + gy*GY  (per column)
    gx = gx_ref[...]
    gy = gy_ref[...]
    y = (dec_ref[0] * (s * s) + dec_ref[1] * s + dec_ref[2]
         + gx * dec_ref[3] + gy * dec_ref[4])                    # (TM, na*no)

    # Per-anchor split via 0/1 selection matmuls (MXU has slack; avoids
    # unaligned lane slicing), store anchor-major output.
    for a in range(na):
        ya = jnp.dot(y, sel_ref[a], preferred_element_type=jnp.float32)
        o_ref[0, a] = ya.astype(o_ref.dtype)


def _detect_forward(im, w1, b1, w2, b2, gx, gy, dec, sel, *, tile_m, na, no):
    """im: (B, Cin, H, W) f32 NCHW.  Returns (B, na*H*W, no) bf16."""
    B, C, H, W = im.shape
    c1 = w1.shape[1]
    nao = na * no
    hw = H * W

    # --- im2col in one fused XLA pass, stored bf16 (single HBM write) ------
    x = jnp.transpose(im, (0, 2, 3, 1))                     # NCHW -> NHWC
    xp = jnp.pad(x, ((0, 0), (1, 1), (1, 1), (0, 0)))
    cols = jnp.concatenate(
        [xp[:, dy:dy + H, dx:dx + W, :] for dy in range(3) for dx in range(3)],
        axis=-1)                                            # (B, H, W, 9*C)
    cols = cols.reshape(B, hw, 9 * C).astype(jnp.bfloat16)

    grid = (B, hw // tile_m)

    flops = 2 * B * hw * (9 * C * c1 + c1 * nao + na * nao * no)
    transcendentals = B * hw * (c1 + nao)
    bytes_accessed = (cols.size * 2 + B * na * hw * no * 2 + B * hw * 2 * 4
                      + (w1.size + w2.size) * 2
                      + (b1.size + b2.size + dec.size + sel.size) * 4)

    out = pl.pallas_call(
        functools.partial(_fused_detect_kernel, na=na, no=no),
        out_shape=jax.ShapeDtypeStruct((B, na, hw, no), jnp.bfloat16),
        grid_spec=pltpu.PrefetchScalarGridSpec(
            num_scalar_prefetch=0,
            grid=grid,
            in_specs=[
                pl.BlockSpec((1, tile_m, 9 * C), lambda b, i: (b, i, 0)),
                pl.BlockSpec((tile_m, 1), lambda b, i: (i, 0)),
                pl.BlockSpec((tile_m, 1), lambda b, i: (i, 0)),
                pl.BlockSpec((9 * C, c1), lambda b, i: (0, 0)),
                pl.BlockSpec((1, c1), lambda b, i: (0, 0)),
                pl.BlockSpec((c1, nao), lambda b, i: (0, 0)),
                pl.BlockSpec((1, nao), lambda b, i: (0, 0)),
                pl.BlockSpec((5, 1, nao), lambda b, i: (0, 0, 0)),
                pl.BlockSpec((na, nao, no), lambda b, i: (0, 0, 0)),
            ],
            out_specs=pl.BlockSpec((1, na, tile_m, no),
                                   lambda b, i: (b, 0, i, 0)),
        ),
        compiler_params=pltpu.CompilerParams(
            dimension_semantics=("parallel", "parallel"),
            vmem_limit_bytes=32 * 1024 * 1024),
        cost_estimate=pl.CostEstimate(
            flops=flops, transcendentals=transcendentals,
            bytes_accessed=bytes_accessed),
    )(cols, gx, gy, w1, b1, w2, b2, dec, sel)

    # (B, na, H*W, no) -> (B, na*H*W, no): pure contiguous reshape, no HBM pass.
    return out.reshape(B, na * hw, no)


def _pick_tile_m(h, w, cap=2048):
    """Largest whole-image-row tile (multiple of 8 rows) not exceeding `cap`."""
    hw = h * w
    best = None
    for th in range(1, h + 1):
        if h % th == 0:
            tm = th * w
            if tm <= cap and (tm % 8 == 0 or tm == hw):
                best = tm if best is None else max(best, tm)
    return best if best is not None else hw


# ----------------------------------------------------------------------------
# Wrapper reproducing DetectMultiBackend semantics
# ----------------------------------------------------------------------------
class PallasDetectMultiBackend:
    def __init__(self, batch=2, in_ch=3, imgsz=16, c1=32, na=3, nc=4, seed=0,
                 max_tile_m=2048):
        self.names = [f"cls{i}" for i in range(nc)]        # stand-in for yaml names
        self.expected_images_shape = (batch, in_ch, imgsz, imgsz)
        self.batch_size = batch
        self.na, self.nc, self.no = na, nc, 5 + nc
        # TODO(synk): real YOLOv5 heads use stride 8/16/32; placeholder stride.
        self.stride = 1.0
        H = W = imgsz
        nao = na * self.no

        key = jax.random.PRNGKey(seed)
        k1, k2, k3, k4 = jax.random.split(key, 4)
        # 3x3 conv weights (kh, kw, cin, cout); f32 master copy for reference.
        # TODO(synk): real PyTorch OIHW weights map via weight.transpose(2,3,1,0).
        self.w1_full = 0.1 * jax.random.normal(k1, (3, 3, in_ch, c1), jnp.float32)
        self.b1 = 0.1 * jax.random.normal(k2, (c1,), jnp.float32)
        self.w2 = 0.1 * jax.random.normal(k3, (c1, nao), jnp.float32)
        self.b2 = 0.1 * jax.random.normal(k4, (nao,), jnp.float32)
        self.anchors = jnp.array([[2.0, 3.0], [4.0, 5.0], [6.0, 4.0]], jnp.float32)

        # Kernel-side parameter layouts (bf16 weights, f32 biases/constants).
        self._w1 = self.w1_full.reshape(9 * in_ch, c1).astype(jnp.bfloat16)
        self._b1 = self.b1.reshape(1, c1)
        self._w2 = self.w2.astype(jnp.bfloat16)
        self._b2 = self.b2.reshape(1, nao)

        # Pixel-coordinate columns (row m = h*W + w) + reference grid.
        gy_, gx_ = jnp.meshgrid(jnp.arange(H, dtype=jnp.float32),
                                jnp.arange(W, dtype=jnp.float32), indexing="ij")
        self.grid = jnp.stack([gx_, gy_], axis=-1)          # (H, W, 2)
        self._gx = gx_.reshape(H * W, 1)
        self._gy = gy_.reshape(H * W, 1)

        # Decode coefficients: y = A*s^2 + B*s + C + gx*GX + gy*GY per column.
        anchors_np = np.asarray(self.anchors)
        A = np.zeros(nao, np.float32)
        Bc = np.zeros(nao, np.float32)
        Cc = np.zeros(nao, np.float32)
        GX = np.zeros(nao, np.float32)
        GY = np.zeros(nao, np.float32)
        s0 = float(self.stride)
        for a in range(na):
            o = a * self.no
            Bc[o + 0] = 2.0 * s0; Cc[o + 0] = -0.5 * s0; GX[o + 0] = s0
            Bc[o + 1] = 2.0 * s0; Cc[o + 1] = -0.5 * s0; GY[o + 1] = s0
            A[o + 2] = 4.0 * anchors_np[a, 0]
            A[o + 3] = 4.0 * anchors_np[a, 1]
            Bc[o + 4:o + self.no] = 1.0
        self._dec = jnp.asarray(np.stack([A, Bc, Cc, GX, GY])[:, None, :])  # (5,1,nao)

        # 0/1 selection matrices: y[:, a*no:(a+1)*no] == y @ sel[a]
        sel = np.zeros((na, nao, self.no), np.float32)
        for a in range(na):
            for j in range(self.no):
                sel[a, a * self.no + j, j] = 1.0
        self._sel = jnp.asarray(sel)

        self.tile_m = _pick_tile_m(H, W, max_tile_m)
        self._jit_forward = jax.jit(functools.partial(
            _detect_forward, tile_m=self.tile_m, na=na, no=self.no))

    def forward(self, im, val=False):
        # DetectMultiBackend.forward semantics: shape-check the 'images'
        # binding, execute, return the 'output' binding.
        assert tuple(im.shape) == self.expected_images_shape, \
            (tuple(im.shape), self.expected_images_shape)
        y = self._jit_forward(im, self._w1, self._b1, self._w2, self._b2,
                              self._gx, self._gy, self._dec, self._sel)
        return (y, []) if val else y

    __call__ = forward

    def warmup(self, imgsz=None, half=False):
        if imgsz is None:
            imgsz = self.expected_images_shape
        im = jnp.zeros(imgsz, jnp.float32)
        self.forward(im)

    # Pure-JAX reference (mirrors the kernel's bf16 quantization points).
    def reference(self, im):
        B, C, H, W = im.shape
        na, no = self.na, self.no
        c1 = self.w1_full.shape[-1]
        q = lambda v: v.astype(jnp.bfloat16).astype(jnp.float32)
        hi = jax.lax.Precision.HIGHEST

        x = jnp.transpose(im, (0, 2, 3, 1))
        xp = jnp.pad(x, ((0, 0), (1, 1), (1, 1), (0, 0)))
        h = jnp.zeros((B, H, W, c1), jnp.float32) + self.b1
        for dy in range(3):
            for dx in range(3):
                h = h + jnp.einsum('bhwc,cn->bhwn',
                                   q(xp[:, dy:dy + H, dx:dx + W, :]),
                                   q(self.w1_full[dy, dx]), precision=hi)
        a1 = h * jax.nn.sigmoid(h)
        logits = jnp.einsum('bhwc,cn->bhwn', q(a1), q(self.w2),
                            precision=hi) + self.b2
        p = jax.nn.sigmoid(logits).reshape(B, H, W, na, no)
        p = jnp.transpose(p, (0, 3, 1, 2, 4))               # (B, na, H, W, no)
        xy = (p[..., 0:2] * 2.0 - 0.5 + self.grid[None, None]) * self.stride
        wh = (p[..., 2:4] * 2.0) ** 2 * self.anchors[None, :, None, None, :]
        y = jnp.concatenate([xy, wh, p[..., 4:]], axis=-1)
        return y.reshape(B, na * H * W, no)


if __name__ == "__main__":
    B, C, S = 2, 3, 16
    model = PallasDetectMultiBackend(batch=B, in_ch=C, imgsz=S)
    model.warmup((B, C, S, S))

    key = jax.random.PRNGKey(0)
    im = jax.random.normal(key, (B, C, S, S), jnp.float32)

    y = model(im)
    jax.block_until_ready(y)
    assert y.shape == (B, 3 * S * S, 5 + 4), y.shape
    assert y.dtype == jnp.bfloat16, y.dtype

    # Sanity check against the pure-JAX reference (bf16 output rounding +
    # transcendental/accumulation noise only).
    y_ref = model.reference(im)
    err = float(jnp.max(jnp.abs(y.astype(jnp.float32) - y_ref)))
    assert err < 0.25, f"max abs error vs reference: {err}"

    yv, extra = model(im, val=True)
    jax.block_until_ready(yv)
    assert extra == []

    print("KERNEL_OK")
</pallas_src>

<mosaic_0001>
module attributes {stable_mosaic.version = 11 : i64} {
  func.func @_fused_detect_kernel(%arg0: i32, %arg1: i32, %arg2: memref<1x256x27xbf16, #tpu.memory_space<vmem>>, %arg3: memref<256x1xf32, #tpu.memory_space<vmem>>, %arg4: memref<256x1xf32, #tpu.memory_space<vmem>>, %arg5: memref<27x32xbf16, #tpu.memory_space<vmem>>, %arg6: memref<1x32xf32, #tpu.memory_space<vmem>>, %arg7: memref<32x27xbf16, #tpu.memory_space<vmem>>, %arg8: memref<1x27xf32, #tpu.memory_space<vmem>>, %arg9: memref<5x1x27xf32, #tpu.memory_space<vmem>>, %arg10: memref<3x27x9xf32, #tpu.memory_space<vmem>>, %arg11: memref<1x3x256x9xbf16, #tpu.memory_space<vmem>>) attributes {dimension_semantics = [#tpu.dimension_semantics<parallel>, #tpu.dimension_semantics<parallel>], iteration_bounds = array<i64: 2, 1>, scalar_prefetch = 0 : i64, scratch_operands = 0 : i64, tpu.core_type = #tpu.core_type<tc>, window_params = [{transform_indices = @transform_0, window_bounds = array<i64: 1, 256, 27>}, {transform_indices = @transform_1, window_bounds = array<i64: 256, 1>}, {transform_indices = @transform_2, window_bounds = array<i64: 256, 1>}, {pipeline_mode = #tpu.pipeline_mode<synchronous>, transform_indices = @transform_3, window_bounds = array<i64: 27, 32>}, {pipeline_mode = #tpu.pipeline_mode<synchronous>, transform_indices = @transform_4, window_bounds = array<i64: 1, 32>}, {pipeline_mode = #tpu.pipeline_mode<synchronous>, transform_indices = @transform_5, window_bounds = array<i64: 32, 27>}, {pipeline_mode = #tpu.pipeline_mode<synchronous>, transform_indices = @transform_6, window_bounds = array<i64: 1, 27>}, {pipeline_mode = #tpu.pipeline_mode<synchronous>, transform_indices = @transform_7, window_bounds = array<i64: 5, 1, 27>}, {pipeline_mode = #tpu.pipeline_mode<synchronous>, transform_indices = @transform_8, window_bounds = array<i64: 3, 27, 9>}, {transform_indices = @transform_9, window_bounds = array<i64: 1, 3, 256, 9>}]} {
    %c0 = arith.constant 0 : index
    %c0_0 = arith.constant 0 : index
    %c0_1 = arith.constant 0 : index
    %0 = vector.load %arg2[%c0, %c0_0, %c0_1] : memref<1x256x27xbf16, #tpu.memory_space<vmem>>, vector<1x256x27xbf16>
    %1 = vector.shape_cast %0 : vector<1x256x27xbf16> to vector<256x27xbf16>
    %c0_2 = arith.constant 0 : index
    %c0_3 = arith.constant 0 : index
    %2 = vector.load %arg5[%c0_2, %c0_3] : memref<27x32xbf16, #tpu.memory_space<vmem>>, vector<27x32xbf16>
    %cst = arith.constant dense<0.000000e+00> : vector<256x32xf32>
    %3 = tpu.matmul %1, %2, %cst {dimension_numbers = #tpu.dot_dimension_numbers<[1], [0], [0], [1], [0, 0, 1, 1], [], []>} : vector<256x27xbf16>, vector<27x32xbf16>, vector<256x32xf32> -> vector<256x32xf32>
    %c0_4 = arith.constant 0 : index
    %c0_5 = arith.constant 0 : index
    %4 = vector.load %arg6[%c0_4, %c0_5] : memref<1x32xf32, #tpu.memory_space<vmem>>, vector<1x32xf32>
    %5 = vector.broadcast %4 : vector<1x32xf32> to vector<256x32xf32>
    %6 = arith.addf %3, %5 : vector<256x32xf32>
    %7 = arith.negf %6 : vector<256x32xf32>
    %8 = math.exp %7 : vector<256x32xf32>
    %cst_6 = arith.constant 1.000000e+00 : f32
    %9 = vector.broadcast %cst_6 : f32 to vector<256x32xf32>
    %10 = arith.addf %9, %8 : vector<256x32xf32>
    %11 = arith.divf %9, %10 : vector<256x32xf32>
    %12 = arith.mulf %6, %11 : vector<256x32xf32>
    %13 = arith.truncf %12 : vector<256x32xf32> to vector<256x32xbf16>
    %c0_7 = arith.constant 0 : index
    %c0_8 = arith.constant 0 : index
    %14 = vector.load %arg7[%c0_7, %c0_8] : memref<32x27xbf16, #tpu.memory_space<vmem>>, vector<32x27xbf16>
    %cst_9 = arith.constant dense<0.000000e+00> : vector<256x27xf32>
    %15 = tpu.matmul %13, %14, %cst_9 {dimension_numbers = #tpu.dot_dimension_numbers<[1], [0], [0], [1], [0, 0, 1, 1], [], []>} : vector<256x32xbf16>, vector<32x27xbf16>, vector<256x27xf32> -> vector<256x27xf32>
    %c0_10 = arith.constant 0 : index
    %c0_11 = arith.constant 0 : index
    %16 = vector.load %arg8[%c0_10, %c0_11] : memref<1x27xf32, #tpu.memory_space<vmem>>, vector<1x27xf32>
    %17 = vector.broadcast %16 : vector<1x27xf32> to vector<256x27xf32>
    %18 = arith.addf %15, %17 : vector<256x27xf32>
    %19 = arith.negf %18 : vector<256x27xf32>
    %20 = math.exp %19 : vector<256x27xf32>
    %cst_12 = arith.constant 1.000000e+00 : f32
    %21 = vector.broadcast %cst_12 : f32 to vector<256x27xf32>
    %22 = arith.addf %21, %20 : vector<256x27xf32>
    %23 = arith.divf %21, %22 : vector<256x27xf32>
    %c0_13 = arith.constant 0 : index
    %c0_14 = arith.constant 0 : index
    %24 = vector.load %arg3[%c0_13, %c0_14] : memref<256x1xf32, #tpu.memory_space<vmem>>, vector<256x1xf32>
    %c0_15 = arith.constant 0 : index
    %c0_16 = arith.constant 0 : index
    %25 = vector.load %arg4[%c0_15, %c0_16] : memref<256x1xf32, #tpu.memory_space<vmem>>, vector<256x1xf32>
    %c0_17 = arith.constant 0 : index
    %c0_18 = arith.constant 0 : index
    %c0_19 = arith.constant 0 : index
    %26 = vector.load %arg9[%c0_17, %c0_18, %c0_19] : memref<5x1x27xf32, #tpu.memory_space<vmem>>, vector<1x1x27xf32>
    %27 = vector.shape_cast %26 : vector<1x1x27xf32> to vector<1x27xf32>
    %28 = arith.mulf %23, %23 : vector<256x27xf32>
    %29 = vector.broadcast %27 : vector<1x27xf32> to vector<256x27xf32>
    %30 = arith.mulf %29, %28 : vector<256x27xf32>
    %c1 = arith.constant 1 : index
    %c0_20 = arith.constant 0 : index
    %c0_21 = arith.constant 0 : index
    %31 = vector.load %arg9[%c1, %c0_20, %c0_21] : memref<5x1x27xf32, #tpu.memory_space<vmem>>, vector<1x1x27xf32>
    %32 = vector.shape_cast %31 : vector<1x1x27xf32> to vector<1x27xf32>
    %33 = vector.broadcast %32 : vector<1x27xf32> to vector<256x27xf32>
    %34 = arith.mulf %33, %23 : vector<256x27xf32>
    %35 = arith.addf %30, %34 : vector<256x27xf32>
    %c2 = arith.constant 2 : index
    %c0_22 = arith.constant 0 : index
    %c0_23 = arith.constant 0 : index
    %36 = vector.load %arg9[%c2, %c0_22, %c0_23] : memref<5x1x27xf32, #tpu.memory_space<vmem>>, vector<1x1x27xf32>
    %37 = vector.shape_cast %36 : vector<1x1x27xf32> to vector<1x27xf32>
    %38 = vector.broadcast %37 : vector<1x27xf32> to vector<256x27xf32>
    %39 = arith.addf %35, %38 : vector<256x27xf32>
    %c3 = arith.constant 3 : index
    %c0_24 = arith.constant 0 : index
    %c0_25 = arith.constant 0 : index
    %40 = vector.load %arg9[%c3, %c0_24, %c0_25] : memref<5x1x27xf32, #tpu.memory_space<vmem>>, vector<1x1x27xf32>
    %41 = vector.shape_cast %40 : vector<1x1x27xf32> to vector<1x27xf32>
    %42 = vector.broadcast %24 : vector<256x1xf32> to vector<256x27xf32>
    %43 = vector.broadcast %41 : vector<1x27xf32> to vector<256x27xf32>
    %44 = arith.mulf %42, %43 : vector<256x27xf32>
    %45 = arith.addf %39, %44 : vector<256x27xf32>
    %c4 = arith.constant 4 : index
    %c0_26 = arith.constant 0 : index
    %c0_27 = arith.constant 0 : index
    %46 = vector.load %arg9[%c4, %c0_26, %c0_27] : memref<5x1x27xf32, #tpu.memory_space<vmem>>, vector<1x1x27xf32>
    %47 = vector.shape_cast %46 : vector<1x1x27xf32> to vector<1x27xf32>
    %48 = vector.broadcast %25 : vector<256x1xf32> to vector<256x27xf32>
    %49 = vector.broadcast %47 : vector<1x27xf32> to vector<256x27xf32>
    %50 = arith.mulf %48, %49 : vector<256x27xf32>
    %51 = arith.addf %45, %50 : vector<256x27xf32>
    %c0_28 = arith.constant 0 : index
    %c0_29 = arith.constant 0 : index
    %c0_30 = arith.constant 0 : index
    %52 = vector.load %arg10[%c0_28, %c0_29, %c0_30] : memref<3x27x9xf32, #tpu.memory_space<vmem>>, vector<1x27x9xf32>
    %53 = vector.shape_cast %52 : vector<1x27x9xf32> to vector<27x9xf32>
    %cst_31 = arith.constant dense<0.000000e+00> : vector<256x9xf32>
    %54 = tpu.matmul %51, %53, %cst_31 {dimension_numbers = #tpu.dot_dimension_numbers<[1], [0], [0], [1], [0, 0, 1, 1], [], []>} : vector<256x27xf32>, vector<27x9xf32>, vector<256x9xf32> -> vector<256x9xf32>
    %55 = arith.truncf %54 : vector<256x9xf32> to vector<256x9xbf16>
    %c0_32 = arith.constant 0 : index
    %c0_33 = arith.constant 0 : index
    %c0_34 = arith.constant 0 : index
    %c0_35 = arith.constant 0 : index
    %56 = vector.load %arg11[%c0_32, %c0_33, %c0_34, %c0_35] : memref<1x3x256x9xbf16, #tpu.memory_space<vmem>>, vector<1x1x256x9xbf16>
    %57 = vector.shape_cast %56 : vector<1x1x256x9xbf16> to vector<256x9xbf16>
    %58 = vector.shape_cast %55 : vector<256x9xbf16> to vector<1x1x256x9xbf16>
    tpu.vector_store %arg11[%c0_32, %c0_33, %c0_34, %c0_35], %58 {strides = array<i32>} : memref<1x3x256x9xbf16, #tpu.memory_space<vmem>>, vector<1x1x256x9xbf16>,
    %c1_36 = arith.constant 1 : index
    %c0_37 = arith.constant 0 : index
    %c0_38 = arith.constant 0 : index
    %59 = vector.load %arg10[%c1_36, %c0_37, %c0_38] : memref<3x27x9xf32, #tpu.memory_space<vmem>>, vector<1x27x9xf32>
    %60 = vector.shape_cast %59 : vector<1x27x9xf32> to vector<27x9xf32>
    %cst_39 = arith.constant dense<0.000000e+00> : vector<256x9xf32>
    %61 = tpu.matmul %51, %60, %cst_39 {dimension_numbers = #tpu.dot_dimension_numbers<[1], [0], [0], [1], [0, 0, 1, 1], [], []>} : vector<256x27xf32>, vector<27x9xf32>, vector<256x9xf32> -> vector<256x9xf32>
    %62 = arith.truncf %61 : vector<256x9xf32> to vector<256x9xbf16>
    %c0_40 = arith.constant 0 : index
    %c1_41 = arith.constant 1 : index
    %c0_42 = arith.constant 0 : index
    %c0_43 = arith.constant 0 : index
    %63 = vector.load %arg11[%c0_40, %c1_41, %c0_42, %c0_43] : memref<1x3x256x9xbf16, #tpu.memory_space<vmem>>, vector<1x1x256x9xbf16>
    %64 = vector.shape_cast %63 : vector<1x1x256x9xbf16> to vector<256x9xbf16>
    %65 = vector.shape_cast %62 : vector<256x9xbf16> to vector<1x1x256x9xbf16>
    tpu.vector_store %arg11[%c0_40, %c1_41, %c0_42, %c0_43], %65 {strides = array<i32>} : memref<1x3x256x9xbf16, #tpu.memory_space<vmem>>, vector<1x1x256x9xbf16>,
    %c2_44 = arith.constant 2 : index
    %c0_45 = arith.constant 0 : index
    %c0_46 = arith.constant 0 : index
    %66 = vector.load %arg10[%c2_44, %c0_45, %c0_46] : memref<3x27x9xf32, #tpu.memory_space<vmem>>, vector<1x27x9xf32>
    %67 = vector.shape_cast %66 : vector<1x27x9xf32> to vector<27x9xf32>
    %cst_47 = arith.constant dense<0.000000e+00> : vector<256x9xf32>
    %68 = tpu.matmul %51, %67, %cst_47 {dimension_numbers = #tpu.dot_dimension_numbers<[1], [0], [0], [1], [0, 0, 1, 1], [], []>} : vector<256x27xf32>, vector<27x9xf32>, vector<256x9xf32> -> vector<256x9xf32>
    %69 = arith.truncf %68 : vector<256x9xf32> to vector<256x9xbf16>
    %c0_48 = arith.constant 0 : index
    %c2_49 = arith.constant 2 : index
    %c0_50 = arith.constant 0 : index
    %c0_51 = arith.constant 0 : index
    %70 = vector.load %arg11[%c0_48, %c2_49, %c0_50, %c0_51] : memref<1x3x256x9xbf16, #tpu.memory_space<vmem>>, vector<1x1x256x9xbf16>
    %71 = vector.shape_cast %70 : vector<1x1x256x9xbf16> to vector<256x9xbf16>
    %72 = vector.shape_cast %69 : vector<256x9xbf16> to vector<1x1x256x9xbf16>
    tpu.vector_store %arg11[%c0_48, %c2_49, %c0_50, %c0_51], %72 {strides = array<i32>} : memref<1x3x256x9xbf16, #tpu.memory_space<vmem>>, vector<1x1x256x9xbf16>,
    return
  }
  func.func @transform_0(%arg0: i32, %arg1: i32) -> (i32, i32, i32) {
    %c0_i32 = arith.constant 0 : i32
    %c0_i32_0 = arith.constant 0 : i32
    return %arg0, %arg1, %c0_i32 : i32, i32, i32
  }
  func.func @transform_1(%arg0: i32, %arg1: i32) -> (i32, i32) {
    %c0_i32 = arith.constant 0 : i32
    %c0_i32_0 = arith.constant 0 : i32
    return %arg1, %c0_i32 : i32, i32
  }
  func.func @transform_2(%arg0: i32, %arg1: i32) -> (i32, i32) {
    %c0_i32 = arith.constant 0 : i32
    %c0_i32_0 = arith.constant 0 : i32
    return %arg1, %c0_i32 : i32, i32
  }
  func.func @transform_3(%arg0: i32, %arg1: i32) -> (i32, i32) {
    %c0_i32 = arith.constant 0 : i32
    %c0_i32_0 = arith.constant 0 : i32
    %c0_i32_1 = arith.constant 0 : i32
    return %c0_i32, %c0_i32_0 : i32, i32
  }
  func.func @transform_4(%arg0: i32, %arg1: i32) -> (i32, i32) {
    %c0_i32 = arith.constant 0 : i32
    %c0_i32_0 = arith.constant 0 : i32
    %c0_i32_1 = arith.constant 0 : i32
    return %c0_i32, %c0_i32_0 : i32, i32
  }
  func.func @transform_5(%arg0: i32, %arg1: i32) -> (i32, i32) {
    %c0_i32 = arith.constant 0 : i32
    %c0_i32_0 = arith.constant 0 : i32
    %c0_i32_1 = arith.constant 0 : i32
    return %c0_i32, %c0_i32_0 : i32, i32
  }
  func.func @transform_6(%arg0: i32, %arg1: i32) -> (i32, i32) {
    %c0_i32 = arith.constant 0 : i32
    %c0_i32_0 = arith.constant 0 : i32
    %c0_i32_1 = arith.constant 0 : i32
    return %c0_i32, %c0_i32_0 : i32, i32
  }
  func.func @transform_7(%arg0: i32, %arg1: i32) -> (i32, i32, i32) {
    %c0_i32 = arith.constant 0 : i32
    %c0_i32_0 = arith.constant 0 : i32
    %c0_i32_1 = arith.constant 0 : i32
    %c0_i32_2 = arith.constant 0 : i32
    return %c0_i32, %c0_i32_0, %c0_i32_1 : i32, i32, i32
  }
  func.func @transform_8(%arg0: i32, %arg1: i32) -> (i32, i32, i32) {
    %c0_i32 = arith.constant 0 : i32
    %c0_i32_0 = arith.constant 0 : i32
    %c0_i32_1 = arith.constant 0 : i32
    %c0_i32_2 = arith.constant 0 : i32
    return %c0_i32, %c0_i32_0, %c0_i32_1 : i32, i32, i32
  }
  func.func @transform_9(%arg0: i32, %arg1: i32) -> (i32, i32, i32, i32) {
    %c0_i32 = arith.constant 0 : i32
    %c0_i32_0 = arith.constant 0 : i32
    %c0_i32_1 = arith.constant 0 : i32
    return %arg0, %c0_i32, %arg1, %c0_i32_0 : i32, i32, i32, i32
  }
}

</mosaic_0001>

<bundles_post_ra>
// kernel: _detect_forward.1
= control target key start
LH: loop header
LB: loop body
LE: loop exit
PB: predicated region body
PF: predicated region fallthrough
CT: control target
= control target key end

     0   :  { %s4848_s30 = smov 0   ;;  %s4850_s10 = smov 0   ;;  %s6367_s0 = inlined_call_operand.vmem [shape: bf16[2,256,27], index: 0, kind: input, shape index: {}]   ;;  %s6368_s1 = inlined_call_operand.vmem [shape: f32[256,1], index: 1, kind: input, shape index: {}]   ;;  %s6369_s2 = inlined_call_operand.vmem [shape: f32[256,1], index: 2, kind: input, shape index: {}]   ;;  %s6370_s3 = inlined_call_operand.vmem [shape: bf16[27,32], index: 3, kind: input, shape index: {}]   ;;  %s6371_s4 = inlined_call_operand.vmem [shape: f32[1,32], index: 4, kind: input, shape index: {}]   ;;  %s6372_s5 = inlined_call_operand.vmem [shape: bf16[32,27], index: 5, kind: input, shape index: {}]   ;;  %s6373_s6 = inlined_call_operand.vmem [shape: f32[1,27], index: 6, kind: input, shape index: {}]   ;;  %s6374_s7 = inlined_call_operand.vmem [shape: f32[5,1,27], index: 7, kind: input, shape index: {}]   ;;  %s6375_s8 = inlined_call_operand.vmem [shape: f32[3,27,9], index: 8, kind: input, shape index: {}]   ;;  %s6376_s9 = inlined_call_operand.vmem [shape: bf16[2,3,256,9], index: 9, kind: output, shape index: {}]  }
   0x1   :  { %s4852_s11 = smov 0  }
   0x2 LB: > { %s31_s12 = sadd.s32 1, %s4789_s10  ;;  %p3545_p0 = scmp.ge.s32.totalorder %s4793_s11, 1  ;;  %s4793_s11 = sphi %s4852_s11, %s19_s11   ;;  %s4789_s10 = sphi %s4850_s10, %s6426_s10   ;;  %s4785_s30 = sphi %s4848_s30, %s6425_s30  }
   0x3   : > { %p33_p1 = scmp.ge.s32.totalorder %s31_s12, 2  ;;  %p330_p2 = scmp.lt.s32.totalorder %s4793_s11, 3 }
   0x5   : > { %s6428_s12 = smov (%p33_p1, %s31_s12), 0  ;;  %p331_p3 = pnand %p3545_p0, %p330_p2 }
   0x7   : > { %334 = sbr.rel (%p331_p3) target bundleno = 902 (0x386), region = 56 }
   0xe   : > { %v4490_v0 = vld [vmem:[%s6370_s3] sm:$0xff]   ;;  %vm600_vm0 = vcmask 1044480   ;;  %v4491_v1 = vld [vmem:[%s6370_s3 + $0x8] sm:$0x3f]   ;;  %vm601_vm1 = vcmask 1045504   ;;  %p385_p4 = scmp.lt.s32.totalorder %s4785_s30, 1 }
   0xf   : > { %4186 = vmatprep.subr.bf16.mxu0 %v4490_v0  ;;  %4456 = vmatprep.subr.bf16.mxu1 %v4490_v0  ;;  %v1433_v2 = vld [vmem:[%s6368_s1] sm:$0xff]  ;;  %v4795_v3 = vmov 65535   ;;  %v4796_v7 = vmov 0   ;;  %v1434_v9 = vld [vmem:[%s6368_s1 + $0x8] sm:$0xff]  ;;  %vm551_vm2 = vcmask 220160   ;;  %v1435_v12 = vld [vmem:[%s6368_s1 + $0x10] sm:$0xff] }
  0x10   : > { %4187 = vmatpush3.bf16.msra.mxu0 %v4490_v0  ;;  %4458 = vmatpush3.bf16.msra.mxu1 %v4490_v0  ;;  %v602_v4 = vsel %vm600_vm0, 4294967295, %v4795_v3  ;;  %v1465_v5 = vld [vmem:[%s6369_s2] sm:$0xff]  ;;  %s6430_s30 = smov (!%p385_p4, %s4785_s30), 1  ;;  %v1466_v10 = vld [vmem:[%s6369_s2 + $0x8] sm:$0xff]  ;;  %v1436_v14 = vld [vmem:[%s6368_s1 + $0x18] sm:$0xff]  ;;  %vm1031_vm3 = vcmask 261120  }
  0x11   : > { %v603_v6 = vsel %vm601_vm1, %v602_v4, 0  ;;  %4488 = vset.pattern.permute.xlu0 %v4796_v7  ;;  %4489 = vset.pattern.permute.xlu1 %v4796_v7  ;;  %s3945_s21 = sshll.u32 %s6430_s30, 7  ;;  %v1467_v18 = vld [vmem:[%s6369_s2 + $0x10] sm:$0xff]  ;;  %v1468_v19 = vld [vmem:[%s6369_s2 + $0x18] sm:$0xff]  ;;  %v1437_v23 = vld [vmem:[%s6368_s1 + $0x20] sm:$0xff]  ;;  %vm2244_vm4 = vcmask 1042432  }
  0x12   : > { %v605_v8 = vand.u32 %v4491_v1, %v603_v6  ;;  %1684 = vperm.xlu0 %4488, %v1433_v2   ;;  %1916 = vperm.xlu1 %4489, %v1465_v5   ;;  %s4890_s28 = scalar_lea.vmem %s6367_s0, %s3945_s21  ;;  %v1438_v26 = vld [vmem:[%s6368_s1 + $0x28] sm:$0xff]  ;;  %v1469_v27 = vld [vmem:[%s6369_s2 + $0x20] sm:$0xff]  ;;  %v1439_v33 = vld [vmem:[%s6368_s1 + $0x30] sm:$0xff]  ;;  %vm4797_vm5 = vmmov 1   ;;  %s4460_s15 = smul.u32 384, %s6430_s30  ;;  %vm2601_vm7 = vcmask 68608  }
  0x13   : > { %v4492_v11 = vld [vmem:[%s4890_s28] sm:$0xff]   ;;  %v4493_v13 = vld [vmem:[%s4890_s28 + $0x8] sm:$0xff]   ;;  %v4496_v17 = vld [vmem:[%s4890_s28 + $0x10] sm:$0xff]  }
  0x14   : > { %4188 = vmatprep.subr.bf16.mxu0 %v605_v8  ;;  %4457 = vmatprep.subr.bf16.mxu1 %v605_v8  ;;  %v4494_v15 = vld [vmem:[%s4890_s28 + $0x40] sm:$0xff]   ;;  %v4495_v16 = vld [vmem:[%s4890_s28 + $0x48] sm:$0xff]   ;;  %v4498_v20 = vld [vmem:[%s4890_s28 + $0x50] sm:$0xff]   ;;  %s6164_s18 = scalar_lea.vmem %s6376_s9, %s4460_s15 }
  0x15   : > { %4189 = vmatpush3.bf16.msra.mxu0 %v605_v8  ;;  %4459 = vmatpush3.bf16.msra.mxu1 %v605_v8  ;;  %v4497_v21 = vld [vmem:[%s4890_s28 + $0x18] sm:$0xff]   ;;  %v4500_v22 = vld [vmem:[%s4890_s28 + $0x20] sm:$0xff]   ;;  %v1470_v28 = vld [vmem:[%s6369_s2 + $0x28] sm:$0xff] }
  0x16   : > { %1689 = vperm.xlu0 %4488, %v1434_v9   ;;  %1921 = vperm.xlu1 %4489, %v1466_v10   ;;  %v4499_v24 = vld [vmem:[%s4890_s28 + $0x58] sm:$0xff]   ;;  %v4502_v25 = vld [vmem:[%s4890_s28 + $0x60] sm:$0xff]   ;;  %v4501_v29 = vld [vmem:[%s4890_s28 + $0x28] sm:$0xff]  }
  0x17   : > { %4190 = vmatprep.mubr.msk.bf16.mxu0 %vm551_vm2, %v4492_v11  ;;  %4206 = vmatprep.mubr.msk.bf16.mxu1 %vm551_vm2, %v4494_v15  ;;  %v4504_v30 = vld [vmem:[%s4890_s28 + $0x30] sm:$0xff]   ;;  %v4503_v31 = vld [vmem:[%s4890_s28 + $0x68] sm:$0xff]   ;;  %v1440_v34 = vld [vmem:[%s6368_s1 + $0x38] sm:$0xff] }
  0x18   : > { %4191 = vmatmul.mubr.msk.bf16.vlgmr.msra.gmra.mrb[0].mxu0 %vm551_vm2, %v4493_v13  ;;  %4207 = vmatmul.mubr.msk.bf16.vlgmr.msra.gmra.mrb[0].mxu1 %vm551_vm2, %v4495_v16  ;;  %v4506_v32 = vld [vmem:[%s4890_s28 + $0x70] sm:$0xff]   ;;  %v4505_v36 = vld [vmem:[%s4890_s28 + $0x38] sm:$0xff]   ;;  %v1441_v39 = vld [vmem:[%s6368_s1 + $0x40] sm:$0xff] }
  0x19   : > { %4194 = vmatprep.mubr.msk.bf16.mxu0 %vm551_vm2, %v4496_v17  ;;  %4210 = vmatprep.mubr.msk.bf16.mxu1 %vm551_vm2, %v4498_v20  ;;  %v1471_v35 = vld [vmem:[%s6369_s2 + $0x30] sm:$0xff]  ;;  %v1472_v37 = vld [vmem:[%s6369_s2 + $0x38] sm:$0xff]  ;;  %v1442_v40 = vld [vmem:[%s6368_s1 + $0x48] sm:$0xff] }
  0x1a   : > { %1694 = vperm.xlu0 %4488, %v1435_v12   ;;  %1699 = vperm.xlu1 %4489, %v1436_v14   ;;  %v4507_v38 = vld [vmem:[%s4890_s28 + $0x78] sm:$0xff]   ;;  %v1473_v41 = vld [vmem:[%s6369_s2 + $0x40] sm:$0xff]  ;;  %v1474_v42 = vld [vmem:[%s6369_s2 + $0x48] sm:$0xff] }
  0x1b   : > { %v1443_v43 = vld [vmem:[%s6368_s1 + $0x50] sm:$0xff]  ;;  %v1444_v44 = vld [vmem:[%s6368_s1 + $0x58] sm:$0xff]  ;;  %v4508_v45 = vld [vmem:[%s6372_s5] sm:$0xff]  }
  0x1c   : > { %v1475_v46 = vld [vmem:[%s6369_s2 + $0x50] sm:$0xff]  ;;  %4222 = vmatprep.subr.bf16.mxu1 %v4508_v45  ;;  %v1476_v47 = vld [vmem:[%s6369_s2 + $0x58] sm:$0xff]  ;;  %v1445_v48 = vld [vmem:[%s6368_s1 + $0x60] sm:$0xff] }
  0x1d   : > { %4223 = vmatpush3.bf16.msra.mxu1 %v4508_v45  ;;  %v1446_v49 = vld [vmem:[%s6368_s1 + $0x68] sm:$0xff]  ;;  %v1477_v50 = vld [vmem:[%s6369_s2 + $0x60] sm:$0xff]  ;;  %v1447_v53 = vld [vmem:[%s6368_s1 + $0x70] sm:$0xff] }
  0x1e   : > { %1926 = vperm.xlu0 %4488, %v1467_v18   ;;  %1931 = vperm.xlu1 %4489, %v1468_v19   ;;  %v1478_v51 = vld [vmem:[%s6369_s2 + $0x68] sm:$0xff]  ;;  %v1448_v54 = vld [vmem:[%s6368_s1 + $0x78] sm:$0xff]  ;;  %v1479_v55 = vld [vmem:[%s6369_s2 + $0x70] sm:$0xff] }
  0x1f   : > { %v4509_v52 = vld [vmem:[%s6372_s5 + $0x8] sm:$0xff]   ;;  %v1480_v56 = vld [vmem:[%s6369_s2 + $0x78] sm:$0xff]  ;;  %v1449_v57 = vld [vmem:[%s6368_s1 + $0x80] sm:$0xff] }
  0x20   : > { %4195 = vmatmul.mubr.msk.bf16.gmra.mrb[4].mxu0 %vm551_vm2, %v4497_v21  ;;  %4211 = vmatmul.mubr.msk.bf16.gmra.mrb[4].mxu1 %vm551_vm2, %v4499_v24  ;;  %v1450_v58 = vld [vmem:[%s6368_s1 + $0x88] sm:$0xff]  ;;  %v1481_v59 = vld [vmem:[%s6369_s2 + $0x80] sm:$0xff]  ;;  %v1451_v61 = vld [vmem:[%s6368_s1 + $0x90] sm:$0xff] }
  0x21   : > { %4198 = vmatprep.mubr.msk.bf16.mxu0 %vm551_vm2, %v4500_v22  ;;  %4214 = vmatprep.mubr.msk.bf16.mxu1 %vm551_vm2, %v4502_v25  ;;  %v1482_v60 = vld [vmem:[%s6369_s2 + $0x88] sm:$0xff]  ;;  %v1452_v62 = vld [vmem:[%s6368_s1 + $0x98] sm:$0xff]  ;;  %v1483_v63 = vld [vmem:[%s6369_s2 + $0x90] sm:$0xff] }
  0x22   : > { %1704 = vperm.xlu0 %4488, %v1437_v23   ;;  %1709 = vperm.xlu1 %4489, %v1438_v26   ;;  %v1484_v0 = vld [vmem:[%s6369_s2 + $0x98] sm:$0xff]  ;;  %v1453_v1 = vld [vmem:[%s6368_s1 + $0xa0] sm:$0xff]  ;;  %v1454_v2 = vld [vmem:[%s6368_s1 + $0xa8] sm:$0xff] }
  0x23   : > { %4224 = vmatprep.subr.bf16.mxu1 %v4509_v52  ;;  %v1485_v3 = vld [vmem:[%s6369_s2 + $0xa0] sm:$0xff]  ;;  %v1486_v4 = vld [vmem:[%s6369_s2 + $0xa8] sm:$0xff]  ;;  %v1455_v5 = vld [vmem:[%s6368_s1 + $0xb0] sm:$0xff] }
  0x24   : > { %4225 = vmatpush3.bf16.msra.mxu1 %v4509_v52  ;;  %v1456_v6 = vld [vmem:[%s6368_s1 + $0xb8] sm:$0xff]  ;;  %v1487_v7 = vld [vmem:[%s6369_s2 + $0xb0] sm:$0xff]  ;;  %v1457_v9 = vld [vmem:[%s6368_s1 + $0xc0] sm:$0xff] }
  0x25   : > { %v1488_v8 = vld [vmem:[%s6369_s2 + $0xb8] sm:$0xff]  ;;  %v1458_v10 = vld [vmem:[%s6368_s1 + $0xc8] sm:$0xff]  ;;  %v1489_v11 = vld [vmem:[%s6369_s2 + $0xc0] sm:$0xff] }
  0x26   : > { %1936 = vperm.xlu0 %4488, %v1469_v27   ;;  %1941 = vperm.xlu1 %4489, %v1470_v28   ;;  %v1490_v12 = vld [vmem:[%s6369_s2 + $0xc8] sm:$0xff]  ;;  %v1459_v13 = vld [vmem:[%s6368_s1 + $0xd0] sm:$0xff]  ;;  %v1460_v14 = vld [vmem:[%s6368_s1 + $0xd8] sm:$0xff] }
  0x27   : > { %v1491_v15 = vld [vmem:[%s6369_s2 + $0xd0] sm:$0xff]  ;;  %v1492_v16 = vld [vmem:[%s6369_s2 + $0xd8] sm:$0xff]  ;;  %v1461_v17 = vld [vmem:[%s6368_s1 + $0xe0] sm:$0xff] }
  0x28   : > { %4199 = vmatmul.mubr.msk.bf16.gmra.mrb[8].mxu0 %vm551_vm2, %v4501_v29  ;;  %4215 = vmatmul.mubr.msk.bf16.gmra.mrb[8].mxu1 %vm551_vm2, %v4503_v31  ;;  %v1462_v18 = vld [vmem:[%s6368_s1 + $0xe8] sm:$0xff]  ;;  %v1493_v19 = vld [vmem:[%s6369_s2 + $0xe0] sm:$0xff]  ;;  %v1463_v21 = vld [vmem:[%s6368_s1 + $0xf0] sm:$0xff] }
  0x29   : > { %4202 = vmatprep.mubr.msk.bf16.mxu0 %vm551_vm2, %v4504_v30  ;;  %4218 = vmatprep.mubr.msk.bf16.mxu1 %vm551_vm2, %v4506_v32  ;;  %v1494_v20 = vld [vmem:[%s6369_s2 + $0xe8] sm:$0xff]  ;;  %v1464_v22 = vld [vmem:[%s6368_s1 + $0xf8] sm:$0xff]  ;;  %v1495_v23 = vld [vmem:[%s6369_s2 + $0xf0] sm:$0xff] }
  0x2a   : > { %1714 = vperm.xlu0 %4488, %v1439_v33   ;;  %1719 = vperm.xlu1 %4489, %v1440_v34   ;;  %v1496_v24 = vld [vmem:[%s6369_s2 + $0xf8] sm:$0xff]  ;;  %v5113_v25 = vld [vmem:[%s6371_s4] ss:$0 sm:$0xff]  ;;  %vm5371_vm6 = vmpackc.low %vm2244_vm4, %vm4797_vm5 }
  0x2e   : > { %1946 = vperm.xlu0 %4488, %v1471_v35   ;;  %1951 = vperm.xlu1 %4489, %v1472_v37  }
  0x30   : > { %4203 = vmatmul.mubr.msk.bf16.gmra.mrb[12].mxu0 %vm551_vm2, %v4505_v36  ;;  %4219 = vmatmul.mubr.msk.bf16.gmra.mrb[12].mxu1 %vm551_vm2, %v4507_v38 }
  0x32   : > { %1724 = vperm.xlu0 %4488, %v1441_v39   ;;  %1729 = vperm.xlu1 %4489, %v1442_v40  }
  0x36   : > { %1956 = vperm.xlu0 %4488, %v1473_v41   ;;  %1961 = vperm.xlu1 %4489, %v1474_v42  }
  0x3a   : > { %1734 = vperm.xlu0 %4488, %v1443_v43   ;;  %1739 = vperm.xlu1 %4489, %v1444_v44  }
  0x3e   : > { %1966 = vperm.xlu0 %4488, %v1475_v46   ;;  %1971 = vperm.xlu1 %4489, %v1476_v47  }
  0x42   : > { %1744 = vperm.xlu0 %4488, %v1445_v48   ;;  %1749 = vperm.xlu1 %4489, %v1446_v49  }
  0x46   : > { %1976 = vperm.xlu0 %4488, %v1477_v50   ;;  %1981 = vperm.xlu1 %4489, %v1478_v51  }
  0x4a   : > { %1754 = vperm.xlu0 %4488, %v1447_v53   ;;  %1759 = vperm.xlu1 %4489, %v1448_v54  }
  0x4e   : > { %1986 = vperm.xlu0 %4488, %v1479_v55   ;;  %1991 = vperm.xlu1 %4489, %v1480_v56  }
  0x52   : > { %1764 = vperm.xlu0 %4488, %v1449_v57   ;;  %1769 = vperm.xlu1 %4489, %v1450_v58  }
  0x56   : > { %1996 = vperm.xlu0 %4488, %v1481_v59   ;;  %2001 = vperm.xlu1 %4489, %v1482_v60  }
  0x5a   : > { %1774 = vperm.xlu0 %4488, %v1451_v61   ;;  %1779 = vperm.xlu1 %4489, %v1452_v62  }
  0x5e   : > { %2006 = vperm.xlu0 %4488, %v1483_v63   ;;  %2011 = vperm.xlu1 %4489, %v1484_v0  }
  0x62   : > { %1784 = vperm.xlu0 %4488, %v1453_v1   ;;  %1789 = vperm.xlu1 %4489, %v1454_v2  }
  0x66   : > { %2016 = vperm.xlu0 %4488, %v1485_v3   ;;  %2021 = vperm.xlu1 %4489, %v1486_v4  }
  0x6a   : > { %1794 = vperm.xlu0 %4488, %v1455_v5   ;;  %1799 = vperm.xlu1 %4489, %v1456_v6  }
  0x6e   : > { %2026 = vperm.xlu0 %4488, %v1487_v7   ;;  %2031 = vperm.xlu1 %4489, %v1488_v8  }
  0x72   : > { %1804 = vperm.xlu0 %4488, %v1457_v9   ;;  %1809 = vperm.xlu1 %4489, %v1458_v10  }
  0x76   : > { %2036 = vperm.xlu0 %4488, %v1489_v11   ;;  %2041 = vperm.xlu1 %4489, %v1490_v12  }
  0x7a   : > { %1814 = vperm.xlu0 %4488, %v1459_v13   ;;  %1819 = vperm.xlu1 %4489, %v1460_v14  }
  0x7e   : > { %2046 = vperm.xlu0 %4488, %v1491_v15   ;;  %2051 = vperm.xlu1 %4489, %v1492_v16  }
  0x82   : > { %1824 = vperm.xlu0 %4488, %v1461_v17   ;;  %1829 = vperm.xlu1 %4489, %v1462_v18  }
  0x86   : > { %2056 = vperm.xlu0 %4488, %v1493_v19   ;;  %2061 = vperm.xlu1 %4489, %v1494_v20  }
  0x8a   : > { %1834 = vperm.xlu0 %4488, %v1463_v21   ;;  %1839 = vperm.xlu1 %4489, %v1464_v22  }
  0x8e   : > { %2066 = vperm.xlu0 %4488, %v1495_v23   ;;  %2071 = vperm.xlu1 %4489, %v1496_v24  }
  0xeb   : > { %v4192_v26 = vpop.f32.mrb[0].mxu0  ;;  %v4208_v31 = vpop.f32.mrb[0].mxu1 }
  0xec   : > { %v5116_v27 = vadd.f32 %v4192_v26, %v5113_v25  ;;  %v641_v28 = vpop.f32.mrb[1].mxu0  ;;  %v5126_v35 = vadd.f32 %v4208_v31, %v5113_v25  ;;  %v705_v36 = vpop.f32.mrb[1].mxu1 }
  0xed   : > { %v5119_v29 = vadd.f32 %v5113_v25, %v641_v28  ;;  %v4193_v30 = vpop.f32.mrb[2].mxu0  ;;  %v5133_v39 = vadd.f32 %v5113_v25, %v705_v36  ;;  %v4209_v40 = vpop.f32.mrb[2].mxu1 }
  0xee   : > { %v3586_v32 = vmul.f32 -1.442695, %v5116_v27  ;;  %v5123_v33 = vadd.f32 %v4193_v30, %v5113_v25  ;;  %v644_v34 = vpop.f32.mrb[3].mxu0  ;;  %v3602_v42 = vmul.f32 -1.442695, %v5126_v35  ;;  %v5138_v43 = vadd.f32 %v4209_v40, %v5113_v25  ;;  %v708_v44 = vpop.f32.mrb[3].mxu1 }
  0xef   : > { %v3584_v37 = vmul.f32 -1.442695, %v5119_v29  ;;  %v5130_v38 = vadd.f32 %v5113_v25, %v644_v34  ;;  %v3600_v46 = vmul.f32 -1.442695, %v5133_v39  ;;  %v5143_v47 = vadd.f32 %v5113_v25, %v708_v44 }
  0xf0   : > { %4510 = vpow2.f32 %v3586_v32  ;;  %v3587_v41 = vmul.f32 -1.442695, %v5123_v33  ;;  %v3603_v48 = vmul.f32 -1.442695, %v5138_v43 }
  0xf1   : > { %4512 = vpow2.f32 %v3584_v37  ;;  %v3585_v45 = vmul.f32 -1.442695, %v5130_v38  ;;  %v3601_v49 = vmul.f32 -1.442695, %v5143_v47 }
  0xf2   : > { %4514 = vpow2.f32 %v3587_v41 }
  0xf3   : > { %4516 = vpow2.f32 %v3585_v45  ;;  %v4196_v50 = vpop.f32.mrb[4].mxu0  ;;  %v4212_v55 = vpop.f32.mrb[4].mxu1 }
  0xf4   : > { %4518 = vpow2.f32 %v3602_v42  ;;  %v5148_v51 = vadd.f32 %v4196_v50, %v5113_v25  ;;  %v657_v52 = vpop.f32.mrb[5].mxu0  ;;  %v5158_v59 = vadd.f32 %v4212_v55, %v5113_v25  ;;  %v721_v60 = vpop.f32.mrb[5].mxu1 }
  0xf5   : > { %4520 = vpow2.f32 %v3600_v46  ;;  %v5151_v53 = vadd.f32 %v5113_v25, %v657_v52  ;;  %v4197_v54 = vpop.f32.mrb[6].mxu0  ;;  %v4213_v63 = vpop.f32.mrb[6].mxu1  ;;  %v5177_v37 = vadd.f32 %v5113_v25, %v721_v60 }
  0xf6   : > { %4522 = vpow2.f32 %v3603_v48  ;;  %v3590_v56 = vmul.f32 -1.442695, %v5148_v51  ;;  %v5155_v57 = vadd.f32 %v4197_v54, %v5113_v25  ;;  %v660_v58 = vpop.f32.mrb[7].mxu0  ;;  %v3606_v1 = vmul.f32 -1.442695, %v5158_v59  ;;  %v724_v3 = vpop.f32.mrb[7].mxu1 }
  0xf7   : > { %4524 = vpow2.f32 %v3601_v49  ;;  %v3588_v61 = vmul.f32 -1.442695, %v5151_v53  ;;  %v5162_v62 = vadd.f32 %v5113_v25, %v660_v58  ;;  %v5167_v2 = vadd.f32 %v4213_v63, %v5113_v25 }
  0xf8   : > { %4526 = vpow2.f32 %v3590_v56  ;;  %v3591_v0 = vmul.f32 -1.442695, %v5155_v57  ;;  %v5183_v44 = vadd.f32 %v5113_v25, %v724_v3  ;;  %v3604_v3 = vmul.f32 -1.442695, %v5177_v37 }
  0xf9   : > { %4528 = vpow2.f32 %v3588_v61  ;;  %v3589_v4 = vmul.f32 -1.442695, %v5162_v62 }
  0xfa   : > { %v4511_v5 = vpop.eup %4510  ;;  %4530 = vpow2.f32 %v3591_v0 }
  0xfb   : > { %v4513_v6 = vpop.eup %4512  ;;  %v866_v7 = vadd.f32 1.0, %v4511_v5  ;;  %4532 = vpow2.f32 %v3589_v4  ;;  %v4200_v8 = vpop.f32.mrb[8].mxu0 }
  0xfc   : > { %v4515_v9 = vpop.eup %4514  ;;  %v864_v10 = vadd.f32 1.0, %v4513_v6  ;;  %4534 = vpow2.f32 %v3606_v1  ;;  %v673_v11 = vpop.f32.mrb[9].mxu0  ;;  %v5189_v50 = vadd.f32 %v4200_v8, %v5113_v25  ;;  %v3607_v8 = vmul.f32 -1.442695, %v5167_v2 }
  0xfd   : > { %v4517_v12 = vpop.eup %4516  ;;  %4536 = vrcp.f32 %v866_v7  ;;  %v867_v13 = vadd.f32 1.0, %v4515_v9  ;;  %v4201_v14 = vpop.f32.mrb[10].mxu0  ;;  %v5192_v52 = vadd.f32 %v5113_v25, %v673_v11  ;;  %v3605_v9 = vmul.f32 -1.442695, %v5183_v44 }
  0xfe   : > { %v4216_v15 = vpop.f32.mrb[8].mxu1  ;;  %v4519_v16 = vpop.eup %4518  ;;  %4538 = vrcp.f32 %v864_v10  ;;  %v865_v17 = vadd.f32 1.0, %v4517_v12  ;;  %v5195_v58 = vadd.f32 %v4201_v14, %v5113_v25  ;;  %v3594_v12 = vmul.f32 -1.442695, %v5189_v50 }
  0xff   : > { %v676_v18 = vpop.f32.mrb[11].mxu0  ;;  %v737_v19 = vpop.f32.mrb[9].mxu1  ;;  %4540 = vrcp.f32 %v867_v13  ;;  %v882_v21 = vadd.f32 1.0, %v4519_v16  ;;  %v5171_v26 = vadd.f32 %v4216_v15, %v5113_v25  ;;  %v3592_v13 = vmul.f32 -1.442695, %v5192_v52 }
 0x100   : > { %v4521_v20 = vpop.eup %4520  ;;  %v4217_v22 = vpop.f32.mrb[10].mxu1  ;;  %4542 = vrcp.f32 %v865_v17  ;;  %v5174_v32 = vadd.f32 %v5113_v25, %v737_v19  ;;  %v5198_v60 = vadd.f32 %v5113_v25, %v676_v18  ;;  %v3595_v17 = vmul.f32 -1.442695, %v5195_v58 }
 0x101   : > { %v4523_v23 = vpop.eup %4522  ;;  %v880_v24 = vadd.f32 1.0, %v4521_v20  ;;  %v740_v28 = vpop.f32.mrb[11].mxu1  ;;  %4544 = vrcp.f32 %v882_v21  ;;  %v5180_v40 = vadd.f32 %v4217_v22, %v5113_v25 }
 0x102   : > { %v4525_v30 = vpop.eup %4524  ;;  %v883_v31 = vadd.f32 1.0, %v4523_v23  ;;  %v5186_v45 = vadd.f32 %v5113_v25, %v740_v28  ;;  %v3593_v18 = vmul.f32 -1.442695, %v5198_v60 }
 0x103   : > { %v4527_v34 = vpop.eup %4526  ;;  %4546 = vrcp.f32 %v880_v24  ;;  %v881_v36 = vadd.f32 1.0, %v4525_v30  ;;  %v4204_v46 = vpop.f32.mrb[12].mxu0 }
 0x104   : > { %v4529_v41 = vpop.eup %4528  ;;  %4548 = vrcp.f32 %v883_v31  ;;  %v870_v42 = vadd.f32 1.0, %v4527_v34  ;;  %v689_v54 = vpop.f32.mrb[13].mxu0 }
 0x105   : > { %v4531_v48 = vpop.eup %4530  ;;  %4550 = vrcp.f32 %v881_v36  ;;  %v868_v49 = vadd.f32 1.0, %v4529_v41  ;;  %v5200_v61 = vpop.f32.mrb[14].mxu0 }
 0x106   : > { %v4533_v55 = vpop.eup %4532  ;;  %4552 = vrcp.f32 %v870_v42  ;;  %v871_v56 = vadd.f32 1.0, %v4531_v48  ;;  %v4220_v63 = vpop.f32.mrb[12].mxu1 }
 0x107   : > { %v4535_v0 = vpop.eup %4534  ;;  %4554 = vrcp.f32 %v868_v49  ;;  %v869_v1 = vadd.f32 1.0, %v4533_v55  ;;  %v5203_v4 = vpop.f32.mrb[15].mxu0  ;;  %v5210_v14 = vadd.f32 %v4220_v63, %v5113_v25  ;;  %v5242_v55 = vadd.f32 %v5113_v25, %v689_v54 }
 0x108   : > { %v753_v5 = vpop.f32.mrb[13].mxu1  ;;  %v4537_v6 = vpop.eup %4536  ;;  %4556 = vrcp.f32 %v871_v56  ;;  %v886_v7 = vadd.f32 1.0, %v4535_v0  ;;  %v3609_v0 = vmul.f32 -1.442695, %v5186_v45 }
 0x109   : > { %v4221_v10 = vpop.f32.mrb[14].mxu1  ;;  %v4539_v11 = vpop.eup %4538  ;;  %4558 = vrcp.f32 %v869_v1  ;;  %v5215_v19 = vadd.f32 %v5113_v25, %v753_v5  ;;  %v962_v21 = vmul.f32 %v4537_v6, %v5116_v27  ;;  %v3610_v27 = vmul.f32 -1.442695, %v5171_v26 }
 0x10a   : > { %v756_v15 = vpop.f32.mrb[15].mxu1  ;;  %v4541_v16 = vpop.eup %4540  ;;  %4560 = vrcp.f32 %v886_v7  ;;  %v5220_v23 = vadd.f32 %v4221_v10, %v5113_v25  ;;  %v960_v28 = vmul.f32 %v4539_v11, %v5119_v29  ;;  %v5235_v29 = vadd.f32 %v4204_v46, %v5113_v25 }
 0x10b   : > { %v4543_v20 = vpop.eup %4542  ;;  %v963_v22 = vmul.f32 %v4541_v16, %v5123_v33  ;;  %4562 = vpow2.f32 %v3604_v3  ;;  %v5225_v31 = vadd.f32 %v5113_v25, %v756_v15  ;;  %v3596_v7 = vmul.f32 -1.442695, %v5242_v55 }
 0x10c   : > { %v4545_v24 = vpop.eup %4544  ;;  %v961_v30 = vmul.f32 %v4543_v20, %v5130_v38  ;;  %4564 = vpow2.f32 %v3607_v8 }
 0x10d   : > { %v4547_v34 = vpop.eup %4546  ;;  %v993_v36 = vpack.c.bf16 %v963_v22, %v962_v21  ;;  %v5228_v41 = vmul.f32 %v4545_v24, %v5126_v35  ;;  %4566 = vpow2.f32 %v3605_v9  ;;  %v3608_v35 = vmul.f32 -1.442695, %v5174_v32 }
 0x10e   : > { %v4549_v33 = vpop.eup %4548  ;;  %v992_v42 = vpack.c.bf16 %v961_v30, %v960_v28  ;;  %v5232_v48 = vmul.f32 %v4547_v34, %v5133_v39  ;;  %4568 = vpow2.f32 %v3594_v12  ;;  %v3611_v39 = vmul.f32 -1.442695, %v5180_v40 }
 0x10f   : > { %v4551_v38 = vpop.eup %4550  ;;  %v5238_v49 = vmul.f32 %v4549_v33, %v5138_v43  ;;  %4570 = vpow2.f32 %v3592_v13 }
 0x110   : > { %v4553_v56 = vpop.eup %4552  ;;  %v5245_v63 = vmul.f32 %v4551_v38, %v5143_v47  ;;  %4572 = vpow2.f32 %v3595_v17  ;;  %4226 = vmatprep.mubr.msk.bf16.mxu1 %vm1031_vm3, %v992_v42  ;;  %v3598_v47 = vmul.f32 -1.442695, %v5235_v29  ;;  %v5269_v38 = vadd.f32 %v5113_v25, %v5203_v4 }
 0x111   : > { %v4555_v46 = vpop.eup %4554  ;;  %v1001_v43 = vpack.c.bf16 %v5238_v49, %v5228_v41  ;;  %4574 = vpow2.f32 %v3593_v18  ;;  %4227 = vmatmul.mubr.msk.bf16.vlgmr.msra.gmra.mrb[16].mxu1 %vm1031_vm3, %v993_v36  ;;  %v966_v5 = vmul.f32 %v4553_v56, %v5148_v51  ;;  %v3614_v4 = vmul.f32 -1.442695, %v5210_v14  ;;  %v5341_v41 = vpop.permute.xlu1 %1916 }
 0x112   : > { %v4557_v54 = vpop.eup %4556  ;;  %v1000_v1 = vpack.c.bf16 %v5245_v63, %v5232_v48  ;;  %4576 = vpow2.f32 %v3610_v27  ;;  %v964_v9 = vmul.f32 %v4555_v46, %v5151_v53  ;;  %v5265_v27 = vadd.f32 %v5200_v61, %v5113_v25 }
 0x113   : > { %v4559_v3 = vpop.eup %4558  ;;  %v967_v6 = vmul.f32 %v4557_v54, %v5155_v57  ;;  %4578 = vpow2.f32 %v3608_v35 }
 0x114   : > { %v4561_v8 = vpop.eup %4560  ;;  %v965_v10 = vmul.f32 %v4559_v3, %v5162_v62  ;;  %4580 = vpow2.f32 %v3611_v39  ;;  %v3599_v54 = vmul.f32 -1.442695, %v5265_v27  ;;  %v3597_v3 = vmul.f32 -1.442695, %v5269_v38 }
 0x115   : > { %v4563_v11 = vpop.eup %4562  ;;  %v995_v12 = vpack.c.bf16 %v967_v6, %v966_v5  ;;  %4582 = vpow2.f32 %v3609_v0  ;;  %v5273_v61 = vmul.f32 %v4561_v8, %v5158_v59  ;;  %v3615_v59 = vmul.f32 -1.442695, %v5220_v23  ;;  %v5345_v49 = vpop.permute.xlu1 %1921 }
 0x116   : > { %v4565_v13 = vpop.eup %4564  ;;  %v994_v15 = vpack.c.bf16 %v965_v10, %v964_v9  ;;  %v884_v16 = vadd.f32 1.0, %v4563_v11  ;;  %4584 = vpow2.f32 %v3598_v47  ;;  %v3612_v9 = vmul.f32 -1.442695, %v5215_v19 }
 0x117   : > { %v4567_v17 = vpop.eup %4566  ;;  %v887_v51 = vadd.f32 1.0, %v4565_v13  ;;  %4586 = vpow2.f32 %v3596_v7 }
 0x118   : > { %v4569_v57 = vpop.eup %4568  ;;  %4588 = vrcp.f32 %v884_v16  ;;  %v885_v18 = vadd.f32 1.0, %v4567_v17  ;;  %4230 = vmatprep.mubr.msk.bf16.mxu1 %vm1031_vm3, %v994_v15 }
 0x119   : > { %v4571_v20 = vpop.eup %4570  ;;  %4590 = vrcp.f32 %v887_v51  ;;  %v874_v53 = vadd.f32 1.0, %v4569_v57  ;;  %4231 = vmatmul.mubr.msk.bf16.gmra.mrb[20].mxu1 %vm1031_vm3, %v995_v12  ;;  %v3613_v12 = vmul.f32 -1.442695, %v5225_v31 }
 0x11a   : > { %v4573_v62 = vpop.eup %4572  ;;  %4592 = vrcp.f32 %v885_v18  ;;  %v872_v21 = vadd.f32 1.0, %v4571_v20 }
 0x11b   : > { %v4575_v22 = vpop.eup %4574  ;;  %4594 = vrcp.f32 %v874_v53  ;;  %v875_v24 = vadd.f32 1.0, %v4573_v62 }
 0x11c   : > { %v4577_v28 = vpop.eup %4576  ;;  %4596 = vrcp.f32 %v872_v21  ;;  %v873_v30 = vadd.f32 1.0, %v4575_v22 }
 0x11d   : > { %v4579_v34 = vpop.eup %4578  ;;  %4598 = vrcp.f32 %v875_v24  ;;  %v890_v36 = vadd.f32 1.0, %v4577_v28 }
 0x11e   : > { %v4581_v33 = vpop.eup %4580  ;;  %4600 = vrcp.f32 %v873_v30  ;;  %v888_v42 = vadd.f32 1.0, %v4579_v34 }
 0x11f   : > { %v4583_v35 = vpop.eup %4582  ;;  %4602 = vrcp.f32 %v890_v36  ;;  %v891_v56 = vadd.f32 1.0, %v4581_v33 }
 0x120   : > { %v4585_v39 = vpop.eup %4584  ;;  %4604 = vrcp.f32 %v888_v42  ;;  %v889_v46 = vadd.f32 1.0, %v4583_v35 }
 0x121   : > { %v4587_v0 = vpop.eup %4586  ;;  %4606 = vrcp.f32 %v891_v56 }
 0x122   : > { %v4589_v47 = vpop.eup %4588  ;;  %4608 = vrcp.f32 %v889_v46  ;;  %v876_v30 = vadd.f32 1.0, %v4587_v0 }
 0x123   : > { %v4591_v5 = vpop.eup %4590  ;;  %v5277_v25 = vmul.f32 %v4589_v47, %v5177_v37  ;;  %4610 = vpow2.f32 %v3599_v54 }
 0x124   : > { %v4593_v6 = vpop.eup %4592  ;;  %v5281_v7 = vmul.f32 %v4591_v5, %v5167_v2  ;;  %4612 = vpow2.f32 %v3597_v3 }
 0x125   : > { %v4595_v10 = vpop.eup %4594  ;;  %v5285_v11 = vmul.f32 %v4593_v6, %v5183_v44  ;;  %4614 = vpow2.f32 %v3614_v4 }
 0x126   : > { %v4597_v8 = vpop.eup %4596  ;;  %v1003_v37 = vpack.c.bf16 %v5281_v7, %v5273_v61  ;;  %v970_v16 = vmul.f32 %v4595_v10, %v5189_v50  ;;  %4616 = vpow2.f32 %v3612_v9  ;;  %v2146_v7 = vld [vmem:[%s6375_s8 + $0x10] sm:$0xff] }
 0x127   : > { %v4599_v13 = vpop.eup %4598  ;;  %v1002_v2 = vpack.c.bf16 %v5285_v11, %v5277_v25  ;;  %v968_v51 = vmul.f32 %v4597_v8, %v5192_v52  ;;  %4618 = vpow2.f32 %v3615_v59  ;;  %v2147_v11 = vld [vmem:[%s6375_s8 + $0x18] sm:$0x7] }
 0x128   : > { %v4601_v15 = vpop.eup %4600  ;;  %v971_v44 = vmul.f32 %v4599_v13, %v5195_v58  ;;  %4620 = vpow2.f32 %v3613_v12  ;;  %v878_v58 = vadd.f32 1.0, %v4585_v39 }
 0x129   : > { %v4603_v17 = vpop.eup %4602  ;;  %v969_v57 = vmul.f32 %v4601_v15, %v5198_v60 }
 0x12a   : > { %v4605_v18 = vpop.eup %4604  ;;  %v997_v20 = vpack.c.bf16 %v971_v44, %v970_v16  ;;  %v986_v53 = vmul.f32 %v4603_v17, %v5171_v26  ;;  %4622 = vrcp.f32 %v878_v58 }
 0x12b   : > { %v4607_v62 = vpop.eup %4606  ;;  %v996_v21 = vpack.c.bf16 %v969_v57, %v968_v51  ;;  %v984_v22 = vmul.f32 %v4605_v18, %v5174_v32  ;;  %4624 = vrcp.f32 %v876_v30  ;;  %v3744_v51 = vld [vmem:[%s6375_s8 + $0x38] sm:$0x7] }
 0x12c   : > { %v4609_v24 = vpop.eup %4608  ;;  %v987_v50 = vmul.f32 %v4607_v62, %v5180_v40 }
 0x12d   : > { %v985_v28 = vmul.f32 %v4609_v24, %v5186_v45  ;;  %4234 = vmatprep.mubr.msk.bf16.mxu1 %vm1031_vm3, %v996_v21  ;;  %v4611_v60 = vpop.eup %4610 }
 0x12e   : > { %v1005_v52 = vpack.c.bf16 %v987_v50, %v986_v53  ;;  %4235 = vmatmul.mubr.msk.bf16.gmra.mrb[24].mxu1 %vm1031_vm3, %v997_v20  ;;  %v4613_v26 = vpop.eup %4612  ;;  %v879_v36 = vadd.f32 1.0, %v4611_v60 }
 0x12f   : > { %v1004_v34 = vpack.c.bf16 %v985_v28, %v984_v22  ;;  %v4615_v33 = vpop.eup %4614  ;;  %v877_v32 = vadd.f32 1.0, %v4613_v26  ;;  %v3843_v26 = vld [vmem:[%s6375_s8 + $0x48] sm:$0xff] }
 0x130   : > { %v4617_v42 = vpop.eup %4616  ;;  %4626 = vrcp.f32 %v879_v36  ;;  %v894_v40 = vadd.f32 1.0, %v4615_v33 }
 0x131   : > { %v4619_v35 = vpop.eup %4618  ;;  %4628 = vrcp.f32 %v877_v32  ;;  %v892_v45 = vadd.f32 1.0, %v4617_v42 }
 0x132   : > { %v4621_v56 = vpop.eup %4620  ;;  %4630 = vrcp.f32 %v894_v40  ;;  %v895_v39 = vadd.f32 1.0, %v4619_v35 }
 0x133   : > { %4632 = vrcp.f32 %v892_v45  ;;  %v893_v46 = vadd.f32 1.0, %v4621_v56 }
 0x134   : > { %4634 = vrcp.f32 %v895_v39  ;;  %v4623_v0 = vpop.eup %4622 }
 0x135   : > { %4636 = vrcp.f32 %v893_v46  ;;  %v4625_v54 = vpop.eup %4624  ;;  %v974_v5 = vmul.f32 %v4623_v0, %v5235_v29  ;;  %v5435_v46 = vld [vmem:[%s6373_s6] ss:$0 sm:$0xff] }
 0x136   : > { %v972_v9 = vmul.f32 %v4625_v54, %v5242_v55 }
 0x13a   : > { %v4627_v47 = vpop.eup %4626 }
 0x13b   : > { %v4629_v3 = vpop.eup %4628  ;;  %v975_v4 = vmul.f32 %v4627_v47, %v5265_v27 }
 0x13c   : > { %v4631_v6 = vpop.eup %4630  ;;  %v973_v10 = vmul.f32 %v4629_v3, %v5269_v38  ;;  %v5355_v38 = vpop.permute.xlu1 %1699 }
 0x13d   : > { %v4633_v59 = vpop.eup %4632  ;;  %v999_v8 = vpack.c.bf16 %v975_v4, %v974_v5  ;;  %v990_v12 = vmul.f32 %v4631_v6, %v5210_v14  ;;  %v2144_v14 = vld [vmem:[%s6375_s8] sm:$0xff] }
 0x13e   : > { %v4635_v13 = vpop.eup %4634  ;;  %v998_v15 = vpack.c.bf16 %v973_v10, %v972_v9  ;;  %v988_v16 = vmul.f32 %v4633_v59, %v5215_v19  ;;  %v2145_v19 = vld [vmem:[%s6375_s8 + $0x8] sm:$0xff] }
 0x13f   : > { %v4637_v44 = vpop.eup %4636  ;;  %v991_v17 = vmul.f32 %v4635_v13, %v5220_v23  ;;  %v4426_v23 = vpack.c.bf16 %v2145_v19, %v2144_v14 }
 0x140   : > { %v989_v29 = vmul.f32 %v4637_v44, %v5225_v31  ;;  %4238 = vmatprep.mubr.msk.bf16.mxu1 %vm1031_vm3, %v998_v15  ;;  %v5339_v31 = vpop.permute.xlu0 %1684  ;;  %v5375_v20 = vpop.permute.xlu1 %1931 }
 0x141   : > { %v1007_v27 = vpack.c.bf16 %v991_v17, %v990_v12  ;;  %4239 = vmatmul.mubr.msk.bf16.gmra.mrb[28].mxu1 %vm1031_vm3, %v999_v8  ;;  %4427 = vmatprep.subr.bf16.mxu0 %v4426_v23 }
 0x142   : > { %v1006_v55 = vpack.c.bf16 %v989_v29, %v988_v16  ;;  %4242 = vmatprep.mubr.msk.bf16.mxu1 %vm1031_vm3, %v1000_v1  ;;  %4429 = vmatpush3.bf16.msra.mxu0 %v4426_v23  ;;  %v3742_v1 = vld [vmem:[%s6375_s8 + $0x28] sm:$0xff] }
 0x144   : > { %v5343_v48 = vpop.permute.xlu0 %1689  ;;  %v5387_v62 = vpop.permute.xlu1 %1709 }
 0x148   : > { %v5347_v63 = vpop.permute.xlu0 %1694  ;;  %v5391_v22 = vpop.permute.xlu1 %1941 }
 0x149   : > { %4243 = vmatmul.mubr.msk.bf16.gmra.mrb[32].mxu1 %vm1031_vm3, %v1001_v43  ;;  %v3741_v43 = vld [vmem:[%s6375_s8 + $0x20] sm:$0xff] }
 0x14a   : > { %4246 = vmatprep.mubr.msk.bf16.mxu1 %vm1031_vm3, %v1002_v2  ;;  %v4436_v61 = vpack.c.bf16 %v3742_v1, %v3741_v43  ;;  %v4430_v2 = vpack.c.bf16 %v2147_v11, %v2146_v7 }
 0x14c   : > { %v5357_v25 = vpop.permute.xlu0 %1926  ;;  %4437 = vmatprep.subr.bf16.mxu1 %v4436_v61  ;;  %4432 = vmatprep.subr.msk.bf16.mxu0 %vm5371_vm6, %v4430_v2  ;;  %v5395_v50 = vpop.permute.xlu1 %1719 }
 0x14d   : > { %4439 = vmatpush3.bf16.msra.mxu1 %v4436_v61  ;;  %4435 = vmatpush3.bf16.msk.msra.mxu0 %vm5371_vm6, %v4430_v2 }
 0x150   : > { %v5379_v53 = vpop.permute.xlu0 %1704  ;;  %v5399_v28 = vpop.permute.xlu1 %1951 }
 0x151   : > { %4247 = vmatmul.mubr.msk.bf16.gmra.mrb[36].mxu1 %vm1031_vm3, %v1003_v37  ;;  %v3743_v37 = vld [vmem:[%s6375_s8 + $0x30] sm:$0xff] }
 0x152   : > { %4250 = vmatprep.mubr.msk.bf16.mxu1 %vm1031_vm3, %v1004_v34  ;;  %v4440_v18 = vpack.c.bf16 %v3744_v51, %v3743_v37  ;;  %v3842_v34 = vld [vmem:[%s6375_s8 + $0x40] sm:$0xff] }
 0x153   : > { %v5413_v36 = vpack.c.bf16 %v3843_v26, %v3842_v34 }
 0x154   : > { %4442 = vmatprep.subr.msk.bf16.mxu1 %vm5371_vm6, %v4440_v18  ;;  %v5389_v21 = vpop.permute.xlu0 %1936 }
 0x155   : > { %4445 = vmatpush3.bf16.msk.msra.mxu1 %vm5371_vm6, %v4440_v18  ;;  %4447 = vmatprep.subr.bf16.mxu0 %v5413_v36 }
 0x158   : > { %v5393_v24 = vpop.permute.xlu0 %1714 }
 0x159   : > { %4251 = vmatmul.mubr.msk.bf16.gmra.mrb[40].mxu1 %vm1031_vm3, %v1005_v52  ;;  %v5403_v52 = vpop.permute.xlu1 %1729 }
 0x15a   : > { %4254 = vmatprep.mubr.msk.bf16.mxu1 %vm1031_vm3, %v1006_v55 }
 0x15c   : > { %v5397_v58 = vpop.permute.xlu0 %1946 }
 0x15d   : > { %v5416_v33 = vpop.permute.xlu1 %1961 }
 0x160   : > { %v5401_v30 = vpop.permute.xlu0 %1724 }
 0x161   : > { %4255 = vmatmul.mubr.msk.bf16.gmra.mrb[44].mxu1 %vm1031_vm3, %v1007_v27  ;;  %v5420_v42 = vpop.permute.xlu1 %1739 }
 0x164   : > { %v5405_v60 = vpop.permute.xlu0 %1956 }
 0x165   : > { %v5424_v35 = vpop.permute.xlu1 %1971 }
 0x168   : > { %v5418_v32 = vpop.permute.xlu0 %1734 }
 0x169   : > { %v5428_v56 = vpop.permute.xlu1 %1749 }
 0x16c   : > { %v5422_v40 = vpop.permute.xlu0 %1966 }
 0x16d   : > { %v5437_v0 = vpop.permute.xlu1 %1981 }
 0x170   : > { %v5426_v45 = vpop.permute.xlu0 %1744 }
 0x171   : > { %v5445_v13 = vpop.permute.xlu1 %1759 }
 0x174   : > { %v5430_v39 = vpop.permute.xlu0 %1976 }
 0x175   : > { %v5451_v19 = vpop.permute.xlu1 %1991 }
 0x178   : > { %v5439_v54 = vpop.permute.xlu0 %1754 }
 0x17c   : > { %v5447_v16 = vpop.permute.xlu0 %1986 }
 0x180   : > { %v5454_v61 = vpop.permute.xlu0 %1764 }
 0x1e4   : > { %v4228_v47 = vpop.f32.mrb[16].mxu1 }
 0x1e5   : > { %v1123_v3 = vadd.f32 %v4228_v47, %v5435_v46  ;;  %v1114_v5 = vpop.f32.mrb[17].mxu1  ;;  %v5457_v47 = vpop.permute.xlu1 %1769 }
 0x1e6   : > { %v1115_v4 = vadd.f32 %v5435_v46, %v1114_v5  ;;  %v4229_v6 = vpop.f32.mrb[18].mxu1 }
 0x1e7   : > { %v3637_v9 = vmul.f32 -1.442695, %v1123_v3  ;;  %v1126_v10 = vadd.f32 %v4229_v6, %v5435_v46  ;;  %v1117_v59 = vpop.f32.mrb[19].mxu1 }
 0x1e8   : > { %v3635_v8 = vmul.f32 -1.442695, %v1115_v4  ;;  %v1118_v12 = vadd.f32 %v5435_v46, %v1117_v59  ;;  %v5459_v4 = vpop.permute.xlu0 %1996 }
 0x1e9   : > { %4638 = vpow2.f32 %v3637_v9  ;;  %v3638_v15 = vmul.f32 -1.442695, %v1126_v10  ;;  %v5464_v9 = vld [vmem:[%s6374_s7 + $0x3] ss:$0 sm:$0xff]  ;;  %v5469_v10 = vld [vmem:[%s6374_s7 + $0x4] ss:$0 sm:$0xff] }
 0x1ea   : > { %4640 = vpow2.f32 %v3635_v8  ;;  %v3636_v44 = vmul.f32 -1.442695, %v1118_v12  ;;  %v5473_v8 = vmul.f32 %v5464_v9, %v5339_v31  ;;  %v5477_v12 = vmul.f32 %v5469_v10, %v5341_v41 }
 0x1eb   : > { %4642 = vpow2.f32 %v3638_v15  ;;  %v5481_v15 = vmul.f32 %v5464_v9, %v5343_v48  ;;  %v5493_v31 = vmul.f32 %v5464_v9, %v5355_v38  ;;  %v5497_v41 = vmul.f32 %v5469_v10, %v5357_v25 }
 0x1ec   : > { %4644 = vpow2.f32 %v3636_v44  ;;  %v4232_v17 = vpop.f32.mrb[20].mxu1  ;;  %v5513_v38 = vpop.permute.xlu0 %1774  ;;  %v5709_v57 = vmul.f32 %v5469_v10, %v5447_v16 }
 0x1ed   : > { %v1139_v29 = vadd.f32 %v4232_v17, %v5435_v46  ;;  %v1130_v27 = vpop.f32.mrb[21].mxu1  ;;  %v5485_v17 = vmul.f32 %v5469_v10, %v5345_v49  ;;  %v5507_v49 = vmul.f32 %v5464_v9, %v5379_v53  ;;  %v5525_v53 = vmul.f32 %v5464_v9, %v5393_v24 }
 0x1ee   : > { %v1131_v55 = vadd.f32 %v5435_v46, %v1130_v27  ;;  %v4233_v14 = vpop.f32.mrb[22].mxu1  ;;  %v5499_v27 = vpop.permute.xlu1 %2001  ;;  %v5541_v24 = vmul.f32 %v5464_v9, %v5401_v30  ;;  %v5558_v30 = vmul.f32 %v5469_v10, %v5416_v33 }
 0x1ef   : > { %v3641_v23 = vmul.f32 -1.442695, %v1139_v29  ;;  %v1142_v43 = vadd.f32 %v4233_v14, %v5435_v46  ;;  %v1133_v1 = vpop.f32.mrb[23].mxu1  ;;  %v5489_v29 = vmul.f32 %v5464_v9, %v5347_v63  ;;  %v5511_v63 = vmul.f32 %v5464_v9, %v5387_v62 }
 0x1f0   : > { %v3639_v7 = vmul.f32 -1.442695, %v1131_v55  ;;  %v1134_v11 = vadd.f32 %v5435_v46, %v1133_v1  ;;  %v5503_v55 = vmul.f32 %v5469_v10, %v5375_v20  ;;  %v5521_v20 = vmul.f32 %v5469_v10, %v5391_v22  ;;  %6389 = vst [vmem:[#allocation2_spill] sm:$0xff] %v5541_v24  ;;  %6392 = vst [vmem:[#allocation5_spill] sm:$0xff] %v5558_v30 }
 0x1f1   : > { %4646 = vpow2.f32 %v3641_v23  ;;  %v3642_v37 = vmul.f32 -1.442695, %v1142_v43  ;;  %v5517_v23 = vmul.f32 %v5469_v10, %v5389_v21  ;;  %v5529_v62 = vmul.f32 %v5464_v9, %v5395_v50 }
 0x1f2   : > { %4648 = vpow2.f32 %v3639_v7  ;;  %v3640_v2 = vmul.f32 -1.442695, %v1134_v11  ;;  %v5533_v7 = vmul.f32 %v5469_v10, %v5397_v58  ;;  %v5537_v22 = vmul.f32 %v5469_v10, %v5399_v28  ;;  %v5546_v11 = vld [vmem:[%s6374_s7 + $0x1] ss:$0 sm:$0xff] }
 0x1f3   : > { %v4639_v51 = vpop.eup %4638  ;;  %4650 = vpow2.f32 %v3642_v37  ;;  %v5550_v58 = vmul.f32 %v5464_v9, %v5403_v52  ;;  %v5554_v28 = vmul.f32 %v5469_v10, %v5405_v60  ;;  %v5571_v52 = vmul.f32 %v5464_v9, %v5420_v42  ;;  %v5573_v60 = vpop.permute.xlu1 %1779 }
 0x1f4   : > { %v4641_v18 = vpop.eup %4640  ;;  %v1339_v34 = vadd.f32 1.0, %v4639_v51  ;;  %4652 = vpow2.f32 %v3640_v2  ;;  %v5563_v2 = vld [vmem:[%s6374_s7] ss:$0 sm:$0xff] }
 0x1f5   : > { %v4643_v26 = vpop.eup %4642  ;;  %v1337_v3 = vadd.f32 1.0, %v4641_v18  ;;  %6390 = vst [vmem:[#allocation3_spill] sm:$0xff] %v5550_v58  ;;  %6391 = vst [vmem:[#allocation4_spill] sm:$0xff] %v5554_v28  ;;  %v5567_v18 = vmul.f32 %v5464_v9, %v5418_v32 }
 0x1f6   : > { %v4645_v5 = vpop.eup %4644  ;;  %4654 = vrcp.f32 %v1339_v34  ;;  %v1340_v6 = vadd.f32 1.0, %v4643_v26  ;;  %6394 = vst [vmem:[#allocation7_spill] sm:$0xff] %v5571_v52 }
 0x1f7   : > { %4656 = vrcp.f32 %v1337_v3  ;;  %v1338_v59 = vadd.f32 1.0, %v4645_v5  ;;  %6393 = vst [vmem:[#allocation6_spill] sm:$0xff] %v5567_v18  ;;  %v5575_v3 = vpop.permute.xlu0 %2006  ;;  %v5594_v18 = vpop.permute.xlu1 %2011 }
 0x1f8   : > { %4658 = vrcp.f32 %v1340_v6 }
 0x1f9   : > { %4660 = vrcp.f32 %v1338_v59 }
 0x1fb   : > { %v4647_v44 = vpop.eup %4646 }
 0x1fc   : > { %v4649_v48 = vpop.eup %4648  ;;  %v1343_v14 = vadd.f32 1.0, %v4647_v44 }
 0x1fd   : > { %v4651_v25 = vpop.eup %4650  ;;  %v1341_v43 = vadd.f32 1.0, %v4649_v48 }
 0x1fe   : > { %v4653_v1 = vpop.eup %4652  ;;  %4662 = vrcp.f32 %v1343_v14  ;;  %v1344_v21 = vadd.f32 1.0, %v4651_v25 }
 0x1ff   : > { %4664 = vrcp.f32 %v1341_v43  ;;  %v1342_v50 = vadd.f32 1.0, %v4653_v1 }
 0x200   : > { %v4655_v37 = vpop.eup %4654  ;;  %4666 = vrcp.f32 %v1344_v21 }
 0x201   : > { %v4657_v51 = vpop.eup %4656  ;;  %v1500_v34 = vmul.f32 %v4655_v37, %v4655_v37  ;;  %4668 = vrcp.f32 %v1342_v50  ;;  %v4236_v33 = vpop.f32.mrb[24].mxu1  ;;  %v1578_v32 = vmul.f32 %v4655_v37, %v5546_v11 }
 0x202   : > { %v4659_v26 = vpop.eup %4658  ;;  %v1498_v5 = vmul.f32 %v4657_v51, %v4657_v51  ;;  %v1155_v6 = vadd.f32 %v4236_v33, %v5435_v46  ;;  %v1146_v59 = vpop.f32.mrb[25].mxu1  ;;  %v1576_v44 = vmul.f32 %v4657_v51, %v5546_v11  ;;  %v5587_v33 = vld [vmem:[%s6374_s7 + $0x2] ss:$0 sm:$0xff] }
 0x203   : > { %v4661_v48 = vpop.eup %4660  ;;  %v1501_v14 = vmul.f32 %v4659_v26, %v4659_v26  ;;  %v1147_v42 = vadd.f32 %v5435_v46, %v1146_v59  ;;  %v4237_v25 = vpop.f32.mrb[26].mxu1  ;;  %v1538_v43 = vmul.f32 %v5563_v2, %v1500_v34  ;;  %v1579_v1 = vmul.f32 %v4659_v26, %v5546_v11 }
 0x204   : > { %v1499_v21 = vmul.f32 %v4661_v48, %v4661_v48  ;;  %v1577_v50 = vmul.f32 %v4661_v48, %v5546_v11  ;;  %v3645_v51 = vmul.f32 -1.442695, %v1155_v6  ;;  %v1158_v37 = vadd.f32 %v4237_v25, %v5435_v46  ;;  %v1149_v52 = vpop.f32.mrb[27].mxu1 }
 0x205   : > { %v3643_v30 = vmul.f32 -1.442695, %v1147_v42  ;;  %v1150_v59 = vadd.f32 %v5435_v46, %v1149_v52  ;;  %v1536_v58 = vmul.f32 %v5563_v2, %v1498_v5  ;;  %v1610_v34 = vadd.f32 %v1578_v32, %v1538_v43  ;;  %v3844_v52 = vld [vmem:[%s6375_s8 + $0x50] sm:$0xff]  ;;  %v3845_v5 = vld [vmem:[%s6375_s8 + $0x58] sm:$0x7] }
 0x206   : > { %v1537_v26 = vmul.f32 %v5563_v2, %v1499_v21  ;;  %4670 = vpow2.f32 %v3645_v51  ;;  %v3646_v28 = vmul.f32 -1.442695, %v1158_v37  ;;  %v1539_v48 = vmul.f32 %v5563_v2, %v1501_v14  ;;  %v5607_v14 = vpop.permute.xlu0 %1784 }
 0x207   : > { %4672 = vpow2.f32 %v3643_v30  ;;  %v3644_v24 = vmul.f32 -1.442695, %v1150_v59  ;;  %v1608_v6 = vadd.f32 %v1576_v44, %v1536_v58  ;;  %v1650_v25 = vadd.f32 %v5587_v33, %v1610_v34  ;;  %6396 = vst [vmem:[#allocation9_spill] sm:$0xff] %v5607_v14 }
 0x208   : > { %v4663_v32 = vpop.eup %4662  ;;  %v5605_v42 = vmul.f32 %v5469_v10, %v5422_v40  ;;  %v1609_v30 = vadd.f32 %v1577_v50, %v1537_v26  ;;  %4674 = vpow2.f32 %v3646_v28  ;;  %v1611_v58 = vadd.f32 %v1579_v1, %v1539_v48 }
 0x209   : > { %v4665_v44 = vpop.eup %4664  ;;  %v5611_v43 = vmul.f32 %v5469_v10, %v5424_v35  ;;  %v1504_v21 = vmul.f32 %v4663_v32, %v4663_v32  ;;  %4676 = vpow2.f32 %v3644_v24  ;;  %v1648_v51 = vadd.f32 %v5587_v33, %v1608_v6 }
 0x20a   : > { %6395 = vst [vmem:[#allocation8_spill] sm:$0xff] %v5605_v42  ;;  %v4667_v37 = vpop.eup %4666  ;;  %v1649_v59 = vadd.f32 %v5587_v33, %v1609_v30  ;;  %v1502_v34 = vmul.f32 %v4665_v44, %v4665_v44  ;;  %v1651_v40 = vadd.f32 %v5587_v33, %v1611_v58  ;;  %v4450_v42 = vpack.c.bf16 %v3845_v5, %v3844_v52  ;;  %v5622_v30 = vpop.permute.xlu1 %1789 }
 0x20b   : > { %v4669_v14 = vpop.eup %4668  ;;  %v1505_v50 = vmul.f32 %v4667_v37, %v4667_v37  ;;  %v1880_v28 = vadd.f32 %v5473_v8, %v1648_v51  ;;  %v1882_v1 = vadd.f32 %v5489_v29, %v1650_v25  ;;  %v1542_v35 = vmul.f32 %v5563_v2, %v1504_v21  ;;  %v5630_v25 = vpop.permute.xlu0 %2016 }
 0x20c   : > { %v1503_v26 = vmul.f32 %v4669_v14, %v4669_v14  ;;  %v1881_v24 = vadd.f32 %v5481_v15, %v1649_v59  ;;  %v1540_v48 = vmul.f32 %v5563_v2, %v1502_v34  ;;  %v1580_v6 = vmul.f32 %v4665_v44, %v5546_v11 }
 0x20d   : > { %v5625_v58 = vadd.f32 %v5477_v12, %v1880_v28  ;;  %v1883_v52 = vadd.f32 %v5493_v31, %v1651_v40  ;;  %v1582_v8 = vmul.f32 %v4663_v32, %v5546_v11  ;;  %v1543_v29 = vmul.f32 %v5563_v2, %v1505_v50 }
 0x20e   : > { %v5633_v5 = vadd.f32 %v5485_v17, %v1881_v24  ;;  %v1612_v15 = vadd.f32 %v1580_v6, %v1540_v48  ;;  %v1541_v21 = vmul.f32 %v5563_v2, %v1503_v26  ;;  %v1581_v44 = vmul.f32 %v4669_v14, %v5546_v11  ;;  %v2022_v26 = vpop.permute.xlu1 %2021 }
 0x20f   : > { %4266 = vmatprep.mubr.msk.f32.mxu0 %vm551_vm2, %v5625_v58  ;;  %4322 = vmatprep.mubr.msk.f32.mxu1 %vm551_vm2, %v5625_v58  ;;  %v5642_v12 = vadd.f32 %v5497_v41, %v1882_v1  ;;  %v1614_v31 = vadd.f32 %v1582_v8, %v1542_v35  ;;  %v1583_v32 = vmul.f32 %v4667_v37, %v5546_v11  ;;  %v1795_v8 = vpop.permute.xlu0 %1794 }
 0x210   : > { %v4671_v51 = vpop.eup %4670  ;;  %v5647_v17 = vmul.f32 %v5464_v9, %v5426_v45  ;;  %4267 = vmatmul.mubr.msk.f32.vlgmr.msra.gmra.mrb[16].mxu0 %vm551_vm2, %v5633_v5  ;;  %4323 = vmatmul.mubr.msk.f32.vlgmr.msra.gmra.mrb[48].mxu1 %vm551_vm2, %v5633_v5  ;;  %v1652_v14 = vadd.f32 %v5587_v33, %v1612_v15  ;;  %v1613_v59 = vadd.f32 %v1581_v44, %v1541_v21 }
 0x211   : > { %6397 = vst [vmem:[#allocation10_spill] sm:$0xff] %v5642_v12  ;;  %v4673_v34 = vpop.eup %4672  ;;  %v5656_v41 = vmul.f32 %v5464_v9, %v5428_v56  ;;  %v1347_v37 = vadd.f32 1.0, %v4671_v51  ;;  %4449 = vmatpush3.bf16.msra.mxu0 %v5413_v36  ;;  %4269 = vmatprep.mubr.msk.f32.mxu0 %vm551_vm2, %v5642_v12  ;;  %v1654_v45 = vadd.f32 %v5587_v33, %v1614_v31 }
 0x212   : > { %v1615_v40 = vadd.f32 %v1583_v32, %v1543_v29  ;;  %v4675_v50 = vpop.eup %4674  ;;  %v1345_v28 = vadd.f32 1.0, %v4673_v34  ;;  %4325 = vmatprep.mubr.msk.f32.mxu1 %vm551_vm2, %v5642_v12  ;;  %v5665_v1 = vadd.f32 %v5503_v55, %v1883_v52  ;;  %v1884_v56 = vadd.f32 %v5507_v49, %v1652_v14  ;;  %4452 = vmatprep.subr.msk.bf16.mxu0 %vm5371_vm6, %v4450_v42 }
 0x213   : > { %v1653_v35 = vadd.f32 %v5587_v33, %v1613_v59  ;;  %v4677_v36 = vpop.eup %4676  ;;  %4678 = vrcp.f32 %v1347_v37  ;;  %v1348_v24 = vadd.f32 1.0, %v4675_v50  ;;  %v1886_v48 = vadd.f32 %v5525_v53, %v1654_v45 }
 0x214   : > { %6398 = vst [vmem:[#allocation11_spill] sm:$0xff] %v5665_v1  ;;  %v1655_v6 = vadd.f32 %v5587_v33, %v1615_v40  ;;  %4680 = vrcp.f32 %v1345_v28  ;;  %v1346_v29 = vadd.f32 1.0, %v4677_v36  ;;  %4270 = vmatmul.mubr.msk.f32.gmra.mrb[18].mxu0 %vm551_vm2, %v5665_v1  ;;  %4326 = vmatmul.mubr.msk.f32.gmra.mrb[50].mxu1 %vm551_vm2, %v5665_v1  ;;  %v5678_v55 = vadd.f32 %v5517_v23, %v1884_v56  ;;  %v6403_v40 = vld [vmem:[#allocation9_spill] sm:$0xff] }
 0x215   : > { %v1885_v49 = vadd.f32 %v5511_v63, %v1653_v35  ;;  %v5683_v52 = vmul.f32 %v5469_v10, %v5430_v39  ;;  %v5687_v53 = vmul.f32 %v5469_v10, %v5437_v0  ;;  %v5691_v15 = vmul.f32 %v5464_v9, %v5439_v54  ;;  %4455 = vmatpush3.bf16.msk.msra.mxu0 %vm5371_vm6, %v4450_v42  ;;  %v4240_v63 = vpop.f32.mrb[28].mxu1 }
 0x216   : > { %6399 = vst [vmem:[#allocation12_spill] sm:$0xff] %v5678_v55  ;;  %4682 = vrcp.f32 %v1348_v24  ;;  %v5697_v23 = vmul.f32 %v5464_v9, %v5445_v13  ;;  %4272 = vmatprep.mubr.msk.f32.mxu0 %vm551_vm2, %v5678_v55  ;;  %4328 = vmatprep.mubr.msk.f32.mxu1 %vm551_vm2, %v5678_v55  ;;  %v1887_v0 = vadd.f32 %v5529_v62, %v1655_v6  ;;  %v1162_v42 = vpop.f32.mrb[29].mxu1 }
 0x217   : > { %4684 = vrcp.f32 %v1346_v29  ;;  %v5704_v39 = vadd.f32 %v5521_v20, %v1885_v49  ;;  %v5713_v54 = vmul.f32 %v5469_v10, %v5451_v19  ;;  %v1171_v13 = vadd.f32 %v4240_v63, %v5435_v46  ;;  %v4241_v44 = vpop.f32.mrb[30].mxu1 }
 0x218   : > { %v5717_v21 = vadd.f32 %v5533_v7, %v1886_v48  ;;  %v5721_v20 = vmul.f32 %v5464_v9, %v5454_v61  ;;  %v5725_v62 = vmul.f32 %v5464_v9, %v5457_v47  ;;  %v1163_v16 = vadd.f32 %v5435_v46, %v1162_v42  ;;  %v1800_v7 = vpop.permute.xlu1 %1799  ;;  %v1165_v32 = vpop.f32.mrb[31].mxu1 }
 0x219   : > { %6400 = vst [vmem:[#allocation13_spill] sm:$0xff] %v5704_v39  ;;  %4273 = vmatmul.mubr.msk.f32.gmra.mrb[20].mxu0 %vm551_vm2, %v5704_v39  ;;  %4329 = vmatmul.mubr.msk.f32.gmra.mrb[52].mxu1 %vm551_vm2, %v5704_v39  ;;  %v5734_v19 = vmul.f32 %v5469_v10, %v5459_v4  ;;  %v5738_v61 = vmul.f32 %v5469_v10, %v5499_v27  ;;  %v3649_v47 = vmul.f32 -1.442695, %v1171_v13  ;;  %v2027_v4 = vpop.permute.xlu0 %2026 }
 0x21a   : > { %6401 = vst [vmem:[#allocation14_spill] sm:$0xff] %v5717_v21  ;;  %v1174_v31 = vadd.f32 %v4241_v44, %v5435_v46  ;;  %4275 = vmatprep.mubr.msk.f32.mxu0 %vm551_vm2, %v5717_v21  ;;  %4331 = vmatprep.mubr.msk.f32.mxu1 %vm551_vm2, %v5717_v21  ;;  %v5747_v51 = vmul.f32 %v5464_v9, %v5513_v38  ;;  %v3647_v14 = vmul.f32 -1.442695, %v1163_v16 }
 0x21b   : > { %v1166_v27 = vadd.f32 %v5435_v46, %v1165_v32  ;;  %v5751_v59 = vadd.f32 %v5537_v22, %v1887_v0  ;;  %v5755_v34 = vmul.f32 %v5464_v9, %v5573_v60  ;;  %v5759_v37 = vmul.f32 %v5469_v10, %v5575_v3 }
 0x21c   : > { %4686 = vpow2.f32 %v3649_v47  ;;  %v3650_v45 = vmul.f32 -1.442695, %v1174_v31  ;;  %v5763_v38 = vmul.f32 %v5469_v10, %v5594_v18  ;;  %v5767_v50 = vmul.f32 %v5464_v9, %v6403_v40  ;;  %v4244_v48 = vpop.f32.mrb[32].mxu1  ;;  %v2032_v6 = vpop.permute.xlu1 %2031 }
 0x21d   : > { %6402 = vst [vmem:[#allocation15_spill] sm:$0xff] %v5751_v59  ;;  %4688 = vpow2.f32 %v3647_v14  ;;  %v3648_v22 = vmul.f32 -1.442695, %v1166_v27  ;;  %4276 = vmatmul.mubr.msk.f32.gmra.mrb[22].mxu0 %vm551_vm2, %v5751_v59  ;;  %4332 = vmatmul.mubr.msk.f32.gmra.mrb[54].mxu1 %vm551_vm2, %v5751_v59  ;;  %v4679_v60 = vpop.eup %4678  ;;  %v5775_v3 = vmul.f32 %v5464_v9, %v5622_v30  ;;  %v5779_v18 = vmul.f32 %v5469_v10, %v5630_v25  ;;  %v1178_v49 = vpop.f32.mrb[33].mxu1  ;;  %v6405_v59 = vld [vmem:[#allocation6_spill] sm:$0xff] }
 0x21e   : > { %v5782_v28 = vmul.f32 %v5469_v10, %v2022_v26  ;;  %4690 = vpow2.f32 %v3650_v45  ;;  %v4681_v56 = vpop.eup %4680  ;;  %v5785_v35 = vmul.f32 %v5464_v9, %v1795_v8  ;;  %v5788_v36 = vmul.f32 %v5464_v9, %v1800_v7  ;;  %v1805_v13 = vpop.permute.xlu0 %1804 }
 0x21f   : > { %v1508_v24 = vmul.f32 %v4679_v60, %v4679_v60  ;;  %4692 = vpow2.f32 %v3648_v22  ;;  %v1506_v29 = vmul.f32 %v4681_v56, %v4681_v56  ;;  %v1187_v25 = vadd.f32 %v4244_v48, %v5435_v46  ;;  %v4245_v16 = vpop.f32.mrb[34].mxu1 }
 0x220   : > { %v4683_v30 = vpop.eup %4682  ;;  %v1584_v26 = vmul.f32 %v4681_v56, %v5546_v11  ;;  %v1586_v63 = vmul.f32 %v4679_v60, %v5546_v11  ;;  %v1179_v42 = vadd.f32 %v5435_v46, %v1178_v49  ;;  %v1190_v32 = vadd.f32 %v4245_v16, %v5435_v46  ;;  %v1181_v14 = vpop.f32.mrb[35].mxu1 }
 0x221   : > { %v4685_v0 = vpop.eup %4684  ;;  %v1509_v8 = vmul.f32 %v4683_v30, %v4683_v30  ;;  %v1546_v44 = vmul.f32 %v5563_v2, %v1508_v24  ;;  %v1587_v7 = vmul.f32 %v4683_v30, %v5546_v11  ;;  %v3653_v31 = vmul.f32 -1.442695, %v1187_v25 }
 0x222   : > { %v1507_v47 = vmul.f32 %v4685_v0, %v4685_v0  ;;  %v1544_v27 = vmul.f32 %v5563_v2, %v1506_v29  ;;  %v3651_v45 = vmul.f32 -1.442695, %v1179_v42  ;;  %v1182_v40 = vadd.f32 %v5435_v46, %v1181_v14  ;;  %v1810_v42 = vpop.permute.xlu1 %1809 }
 0x223   : > { %v1585_v22 = vmul.f32 %v4685_v0, %v5546_v11  ;;  %v1618_v60 = vadd.f32 %v1586_v63, %v1546_v44  ;;  %4694 = vpow2.f32 %v3653_v31  ;;  %v3654_v56 = vmul.f32 -1.442695, %v1190_v32 }
 0x224   : > { %v1616_v48 = vadd.f32 %v1584_v26, %v1544_v27  ;;  %v1545_v24 = vmul.f32 %v5563_v2, %v1507_v47  ;;  %4696 = vpow2.f32 %v3651_v45  ;;  %v3652_v30 = vmul.f32 -1.442695, %v1182_v40  ;;  %v2037_v47 = vpop.permute.xlu0 %2036  ;;  %v4248_v32 = vpop.f32.mrb[36].mxu1  ;;  %v6404_v40 = vld [vmem:[#allocation2_spill] sm:$0xff] }
 0x225   : > { %v1658_v25 = vadd.f32 %v5587_v33, %v1618_v60  ;;  %v1547_v49 = vmul.f32 %v5563_v2, %v1509_v8  ;;  %v5804_v29 = vmul.f32 %v5469_v10, %v2027_v4  ;;  %4698 = vpow2.f32 %v3654_v56  ;;  %v1194_v4 = vpop.f32.mrb[37].mxu1 }
 0x226   : > { %v4687_v16 = vpop.eup %4686  ;;  %v1656_v0 = vadd.f32 %v5587_v33, %v1616_v48  ;;  %v1617_v63 = vadd.f32 %v1585_v22, %v1545_v24  ;;  %v5808_v26 = vmul.f32 %v5469_v10, %v2032_v6  ;;  %4700 = vpow2.f32 %v3652_v30  ;;  %v4249_v24 = vpop.f32.mrb[38].mxu1 }
 0x227   : > { %v4689_v44 = vpop.eup %4688  ;;  %v1351_v31 = vadd.f32 1.0, %v4687_v16  ;;  %v1619_v14 = vadd.f32 %v1587_v7, %v1547_v49  ;;  %v1203_v45 = vadd.f32 %v4248_v32, %v5435_v46  ;;  %v1195_v6 = vadd.f32 %v5435_v46, %v1194_v4  ;;  %v6408_v4 = vld [vmem:[#allocation3_spill] sm:$0xff] }
 0x228   : > { %v4691_v27 = vpop.eup %4690  ;;  %v1349_v8 = vadd.f32 1.0, %v4689_v44  ;;  %v1888_v60 = vadd.f32 %v6404_v40, %v1656_v0  ;;  %v1657_v56 = vadd.f32 %v5587_v33, %v1617_v63  ;;  %v1890_v16 = vadd.f32 %v6405_v59, %v1658_v25  ;;  %v1197_v44 = vpop.f32.mrb[39].mxu1  ;;  %v6406_v40 = vld [vmem:[#allocation4_spill] sm:$0xff] }
 0x229   : > { %v4693_v48 = vpop.eup %4692  ;;  %4702 = vrcp.f32 %v1351_v31  ;;  %v1352_v22 = vadd.f32 1.0, %v4691_v27  ;;  %v3657_v7 = vmul.f32 -1.442695, %v1203_v45  ;;  %v1206_v49 = vadd.f32 %v4249_v24, %v5435_v46  ;;  %v2042_v31 = vpop.permute.xlu1 %2041 }
 0x22a   : > { %4704 = vrcp.f32 %v1349_v8  ;;  %v1350_v30 = vadd.f32 1.0, %v4693_v48  ;;  %v3655_v32 = vmul.f32 -1.442695, %v1195_v6  ;;  %v1198_v0 = vadd.f32 %v5435_v46, %v1197_v44  ;;  %v1815_v45 = vpop.permute.xlu0 %1814 }
 0x22b   : > { %4706 = vrcp.f32 %v1352_v22  ;;  %v5818_v63 = vadd.f32 %v6406_v40, %v1888_v60  ;;  %v3658_v27 = vmul.f32 -1.442695, %v1206_v49  ;;  %v1889_v21 = vadd.f32 %v6408_v4, %v1657_v56  ;;  %v6411_v22 = vld [vmem:[#allocation7_spill] sm:$0xff]  ;;  %v6412_v49 = vld [vmem:[#allocation8_spill] sm:$0xff] }
 0x22c   : > { %4708 = vrcp.f32 %v1350_v30  ;;  %v1659_v59 = vadd.f32 %v5587_v33, %v1619_v14  ;;  %v5823_v25 = vmul.f32 %v5464_v9, %v1805_v13  ;;  %v5826_v8 = vmul.f32 %v5464_v9, %v1810_v42  ;;  %v6409_v14 = vld [vmem:[#allocation5_spill] sm:$0xff] }
 0x22d   : > { %6407 = vst [vmem:[#allocation9_spill] sm:$0xff] %v5818_v63  ;;  %4710 = vpow2.f32 %v3657_v7  ;;  %v3656_v48 = vmul.f32 -1.442695, %v1198_v0  ;;  %4278 = vmatprep.mubr.msk.f32.mxu0 %vm551_vm2, %v5818_v63  ;;  %4334 = vmatprep.mubr.msk.f32.mxu1 %vm551_vm2, %v5818_v63  ;;  %v4695_v60 = vpop.eup %4694  ;;  %v5833_v56 = vmul.f32 %v5469_v10, %v2037_v47  ;;  %v5836_v13 = vadd.f32 %v6409_v14, %v1889_v21  ;;  %v4252_v7 = vpop.f32.mrb[40].mxu1 }
 0x22e   : > { %4712 = vpow2.f32 %v3655_v32  ;;  %v1891_v42 = vadd.f32 %v6411_v22, %v1659_v59  ;;  %v4697_v6 = vpop.eup %4696  ;;  %v5840_v24 = vmul.f32 %v5469_v10, %v2042_v31  ;;  %v1355_v30 = vadd.f32 1.0, %v4695_v60  ;;  %v1210_v40 = vpop.f32.mrb[41].mxu1 }
 0x22f   : > { %6410 = vst [vmem:[#allocation2_spill] sm:$0xff] %v5836_v13  ;;  %4714 = vpow2.f32 %v3658_v27  ;;  %v5843_v44 = vadd.f32 %v6412_v49, %v1890_v16  ;;  %v4699_v0 = vpop.eup %4698  ;;  %v5846_v47 = vmul.f32 %v5464_v9, %v1815_v45  ;;  %v1353_v32 = vadd.f32 1.0, %v4697_v6  ;;  %4279 = vmatmul.mubr.msk.f32.gmra.mrb[24].mxu0 %vm551_vm2, %v5836_v13  ;;  %4335 = vmatmul.mubr.msk.f32.gmra.mrb[56].mxu1 %vm551_vm2, %v5836_v13  ;;  %v4253_v4 = vpop.f32.mrb[42].mxu1 }
 0x230   : > { %4716 = vpow2.f32 %v3656_v48  ;;  %v1219_v21 = vadd.f32 %v4252_v7, %v5435_v46  ;;  %v4701_v31 = vpop.eup %4700  ;;  %v1356_v27 = vadd.f32 1.0, %v4699_v0  ;;  %v1211_v16 = vadd.f32 %v5435_v46, %v1210_v40  ;;  %v1820_v45 = vpop.permute.xlu1 %1819 }
 0x231   : > { %6413 = vst [vmem:[#allocation6_spill] sm:$0xff] %v5843_v44  ;;  %4718 = vrcp.f32 %v1355_v30  ;;  %4281 = vmatprep.mubr.msk.f32.mxu0 %vm551_vm2, %v5843_v44  ;;  %4337 = vmatprep.mubr.msk.f32.mxu1 %vm551_vm2, %v5843_v44  ;;  %v5859_v59 = vadd.f32 %v5611_v43, %v1891_v42  ;;  %v1354_v48 = vadd.f32 1.0, %v4701_v31  ;;  %v1222_v14 = vadd.f32 %v4253_v4, %v5435_v46  ;;  %v1213_v22 = vpop.f32.mrb[43].mxu1  ;;  %v2047_v7 = vpop.permute.xlu0 %2046 }
 0x232   : > { %4720 = vrcp.f32 %v1353_v32  ;;  %v3661_v60 = vmul.f32 -1.442695, %v1219_v21  ;;  %v5863_v30 = vmul.f32 %v5464_v9, %v1820_v45  ;;  %v3659_v49 = vmul.f32 -1.442695, %v1211_v16 }
 0x233   : > { %6414 = vst [vmem:[#allocation4_spill] sm:$0xff] %v5859_v59  ;;  %v4703_v6 = vpop.eup %4702  ;;  %4722 = vrcp.f32 %v1356_v27  ;;  %v1214_v0 = vadd.f32 %v5435_v46, %v1213_v22  ;;  %v5867_v43 = vmul.f32 %v5469_v10, %v2047_v7  ;;  %v3662_v32 = vmul.f32 -1.442695, %v1222_v14  ;;  %4282 = vmatmul.mubr.msk.f32.gmra.mrb[26].mxu0 %vm551_vm2, %v5859_v59  ;;  %4338 = vmatmul.mubr.msk.f32.gmra.mrb[58].mxu1 %vm551_vm2, %v5859_v59 }
 0x234   : > { %v4705_v40 = vpop.eup %4704  ;;  %v1512_v42 = vmul.f32 %v4703_v6, %v4703_v6  ;;  %4724 = vrcp.f32 %v1354_v48  ;;  %v1590_v27 = vmul.f32 %v4703_v6, %v5546_v11  ;;  %v4256_v7 = vpop.f32.mrb[44].mxu1 }
 0x235   : > { %v4707_v9 = vpop.eup %4706  ;;  %v1510_v21 = vmul.f32 %v4705_v40, %v4705_v40  ;;  %4726 = vpow2.f32 %v3661_v60  ;;  %v3660_v31 = vmul.f32 -1.442695, %v1214_v0  ;;  %v1588_v45 = vmul.f32 %v4705_v40, %v5546_v11  ;;  %v1226_v0 = vpop.f32.mrb[45].mxu1 }
 0x236   : > { %v4709_v16 = vpop.eup %4708  ;;  %v1513_v4 = vmul.f32 %v4707_v9, %v4707_v9  ;;  %4728 = vpow2.f32 %v3659_v49  ;;  %v1550_v48 = vmul.f32 %v5563_v2, %v1512_v42  ;;  %v1235_v6 = vadd.f32 %v4256_v7, %v5435_v46  ;;  %v4257_v42 = vpop.f32.mrb[46].mxu1 }
 0x237   : > { %v4711_v14 = vpop.eup %4710  ;;  %v1511_v22 = vmul.f32 %v4709_v16, %v4709_v16  ;;  %4730 = vpow2.f32 %v3662_v32  ;;  %v1548_v44 = vmul.f32 %v5563_v2, %v1510_v21  ;;  %v1589_v59 = vmul.f32 %v4709_v16, %v5546_v11 }
 0x238   : > { %v4713_v13 = vpop.eup %4712  ;;  %v1359_v60 = vadd.f32 1.0, %v4711_v14  ;;  %4732 = vpow2.f32 %v3660_v31  ;;  %v1622_v63 = vadd.f32 %v1590_v27, %v1550_v48  ;;  %v1227_v40 = vadd.f32 %v5435_v46, %v1226_v0  ;;  %v1229_v14 = vpop.f32.mrb[47].mxu1 }
 0x239   : > { %v4715_v49 = vpop.eup %4714  ;;  %v1357_v39 = vadd.f32 1.0, %v4713_v13  ;;  %v1620_v55 = vadd.f32 %v1588_v45, %v1548_v44  ;;  %v1549_v32 = vmul.f32 %v5563_v2, %v1511_v22  ;;  %v3665_v12 = vmul.f32 -1.442695, %v1235_v6 }
 0x23a   : > { %v4717_v1 = vpop.eup %4716  ;;  %4734 = vrcp.f32 %v1359_v60  ;;  %v1360_v21 = vadd.f32 1.0, %v4715_v49  ;;  %v1238_v16 = vadd.f32 %v4257_v42, %v5435_v46  ;;  %v3663_v27 = vmul.f32 -1.442695, %v1227_v40 }
 0x23b   : > { %v5882_v31 = vpop.eup %4718  ;;  %4736 = vrcp.f32 %v1357_v39  ;;  %v1358_v7 = vadd.f32 1.0, %v4717_v1  ;;  %v1230_v13 = vadd.f32 %v5435_v46, %v1229_v14  ;;  %v1660_v44 = vadd.f32 %v5587_v33, %v1620_v55 }
 0x23c   : > { %v4721_v48 = vpop.eup %4720  ;;  %4738 = vrcp.f32 %v1360_v21  ;;  %v3666_v0 = vmul.f32 -1.442695, %v1238_v16  ;;  %v1591_v45 = vmul.f32 %v4707_v9, %v5546_v11  ;;  %v1516_v60 = vmul.f32 %v5882_v31, %v5882_v31 }
 0x23d   : > { %v5887_v22 = vpop.eup %4722  ;;  %4740 = vrcp.f32 %v1358_v7  ;;  %v3664_v6 = vmul.f32 -1.442695, %v1230_v13  ;;  %v1621_v49 = vadd.f32 %v1589_v59, %v1549_v32  ;;  %v1514_v1 = vmul.f32 %v4721_v48, %v4721_v48 }
 0x23e   : > { %v4725_v39 = vpop.eup %4724  ;;  %4742 = vpow2.f32 %v3665_v12  ;;  %v1892_v46 = vadd.f32 %v5647_v17, %v1660_v44  ;;  %v1662_v40 = vadd.f32 %v5587_v33, %v1622_v63  ;;  %v1551_v9 = vmul.f32 %v5563_v2, %v1513_v4 }
 0x23f   : > { %v4727_v42 = vpop.eup %4726  ;;  %v1515_v21 = vmul.f32 %v4725_v39, %v4725_v39  ;;  %4744 = vpow2.f32 %v3663_v27  ;;  %v1661_v55 = vadd.f32 %v5587_v33, %v1621_v49  ;;  %v1517_v27 = vmul.f32 %v5887_v22, %v5887_v22 }
 0x240   : > { %v4729_v16 = vpop.eup %4728  ;;  %v1363_v14 = vadd.f32 1.0, %v4727_v42  ;;  %4746 = vpow2.f32 %v3666_v0  ;;  %v5896_v7 = vadd.f32 %v5683_v52, %v1892_v46  ;;  %v1894_v59 = vadd.f32 %v5691_v15, %v1662_v40 }
 0x241   : > { %v4731_v12 = vpop.eup %4730  ;;  %v1361_v32 = vadd.f32 1.0, %v4729_v16  ;;  %4748 = vpow2.f32 %v3664_v6  ;;  %v1893_v17 = vadd.f32 %v5656_v41, %v1661_v55  ;;  %v1623_v63 = vadd.f32 %v1591_v45, %v1551_v9  ;;  %v2052_v45 = vpop.permute.xlu1 %2051 }
 0x242   : > { %v4733_v13 = vpop.eup %4732  ;;  %4750 = vrcp.f32 %v1363_v14  ;;  %v1364_v4 = vadd.f32 1.0, %v4731_v12  ;;  %4284 = vmatprep.mubr.msk.f32.mxu0 %vm551_vm2, %v5896_v7  ;;  %4340 = vmatprep.mubr.msk.f32.mxu1 %vm551_vm2, %v5896_v7  ;;  %v1552_v52 = vmul.f32 %v5563_v2, %v1514_v1  ;;  %v5914_v6 = vadd.f32 %v5709_v57, %v1894_v59 }
 0x243   : > { %4752 = vrcp.f32 %v1361_v32  ;;  %v1362_v15 = vadd.f32 1.0, %v4733_v13  ;;  %v5908_v0 = vadd.f32 %v5687_v53, %v1893_v17  ;;  %v1663_v41 = vadd.f32 %v5587_v33, %v1623_v63 }
 0x244   : > { %v5911_v44 = vpop.eup %4734  ;;  %v1592_v49 = vmul.f32 %v4721_v48, %v5546_v11  ;;  %v1553_v46 = vmul.f32 %v5563_v2, %v1515_v21  ;;  %v1593_v40 = vmul.f32 %v4725_v39, %v5546_v11  ;;  %v5920_v42 = vmul.f32 %v5469_v10, %v2052_v45 }
 0x245   : > { %v4737_v1 = vpop.eup %4736  ;;  %4754 = vrcp.f32 %v1362_v15  ;;  %4285 = vmatmul.mubr.msk.f32.gmra.mrb[28].mxu0 %vm551_vm2, %v5908_v0  ;;  %4341 = vmatmul.mubr.msk.f32.gmra.mrb[60].mxu1 %vm551_vm2, %v5908_v0  ;;  %v1895_v53 = vadd.f32 %v5697_v23, %v1663_v41  ;;  %v1554_v57 = vmul.f32 %v5563_v2, %v1516_v60  ;;  %v1520_v9 = vmul.f32 %v5911_v44, %v5911_v44 }
 0x246   : > { %v5928_v48 = vpop.eup %4738  ;;  %v1518_v21 = vmul.f32 %v4737_v1, %v4737_v1  ;;  %4756 = vrcp.f32 %v1364_v4  ;;  %4287 = vmatprep.mubr.msk.f32.mxu0 %vm551_vm2, %v5914_v6  ;;  %4343 = vmatprep.mubr.msk.f32.mxu1 %vm551_vm2, %v5914_v6  ;;  %v1624_v10 = vadd.f32 %v1592_v49, %v1552_v52  ;;  %v1625_v39 = vadd.f32 %v1593_v40, %v1553_v46 }
 0x247   : > { %v4741_v55 = vpop.eup %4740  ;;  %v5937_v23 = vadd.f32 %v5713_v54, %v1895_v53  ;;  %v1594_v60 = vmul.f32 %v5882_v31, %v5546_v11  ;;  %v1555_v16 = vmul.f32 %v5563_v2, %v1517_v27  ;;  %v1595_v17 = vmul.f32 %v5887_v22, %v5546_v11 }
 0x248   : > { %v4743_v14 = vpop.eup %4742  ;;  %v1519_v59 = vmul.f32 %v4741_v55, %v4741_v55  ;;  %v1664_v12 = vadd.f32 %v5587_v33, %v1624_v10  ;;  %v1665_v32 = vadd.f32 %v5587_v33, %v1625_v39  ;;  %v1556_v31 = vmul.f32 %v5563_v2, %v1518_v21 }
 0x249   : > { %v4745_v63 = vpop.eup %4744  ;;  %v1367_v13 = vadd.f32 1.0, %v4743_v14  ;;  %4288 = vmatmul.mubr.msk.f32.gmra.mrb[30].mxu0 %vm551_vm2, %v5937_v23  ;;  %4344 = vmatmul.mubr.msk.f32.gmra.mrb[62].mxu1 %vm551_vm2, %v5937_v23  ;;  %v1626_v54 = vadd.f32 %v1594_v60, %v1554_v57  ;;  %v1596_v27 = vmul.f32 %v4737_v1, %v5546_v11  ;;  %v1627_v22 = vadd.f32 %v1595_v17, %v1555_v16 }
 0x24a   : > { %v4747_v4 = vpop.eup %4746  ;;  %v1365_v52 = vadd.f32 1.0, %v4745_v63  ;;  %v1896_v15 = vadd.f32 %v5721_v20, %v1664_v12  ;;  %v1897_v41 = vadd.f32 %v5725_v62, %v1665_v32  ;;  %v1521_v20 = vmul.f32 %v5928_v48, %v5928_v48 }
 0x24b   : > { %v4749_v45 = vpop.eup %4748  ;;  %4758 = vrcp.f32 %v1367_v13  ;;  %v1368_v49 = vadd.f32 1.0, %v4747_v4  ;;  %v1666_v46 = vadd.f32 %v5587_v33, %v1626_v54  ;;  %v1628_v40 = vadd.f32 %v1596_v27, %v1556_v31  ;;  %v5992_v31 = vpop.permute.xlu0 %1824 }
 0x24c   : > { %v4751_v53 = vpop.eup %4750  ;;  %4760 = vrcp.f32 %v1365_v52  ;;  %v1366_v57 = vadd.f32 1.0, %v4749_v45  ;;  %v5956_v21 = vadd.f32 %v5734_v19, %v1896_v15  ;;  %v5959_v1 = vadd.f32 %v5738_v61, %v1897_v41  ;;  %v1830_v41 = vpop.permute.xlu1 %1829 }
 0x24d   : > { %v4753_v10 = vpop.eup %4752  ;;  %4762 = vrcp.f32 %v1368_v49  ;;  %v1898_v62 = vadd.f32 %v5747_v51, %v1666_v46  ;;  %v1667_v39 = vadd.f32 %v5587_v33, %v1627_v22  ;;  %v1668_v19 = vadd.f32 %v5587_v33, %v1628_v40 }
 0x24e   : > { %v1522_v60 = vmul.f32 %v4753_v10, %v4753_v10  ;;  %4764 = vrcp.f32 %v1366_v57  ;;  %4290 = vmatprep.mubr.msk.f32.mxu0 %vm551_vm2, %v5956_v21  ;;  %4346 = vmatprep.mubr.msk.f32.mxu1 %vm551_vm2, %v5956_v21  ;;  %v1557_v61 = vmul.f32 %v5563_v2, %v1519_v59  ;;  %v1524_v14 = vmul.f32 %v4751_v53, %v4751_v53 }
 0x24f   : > { %v4755_v16 = vpop.eup %4754  ;;  %4291 = vmatmul.mubr.msk.f32.gmra.mrb[32].mxu0 %vm551_vm2, %v5959_v1  ;;  %4347 = vmatmul.mubr.msk.f32.gmra.mrb[64].mxu1 %vm551_vm2, %v5959_v1  ;;  %v5976_v51 = vadd.f32 %v5759_v37, %v1898_v62  ;;  %v1899_v12 = vadd.f32 %v5755_v34, %v1667_v39  ;;  %v1900_v63 = vadd.f32 %v5767_v50, %v1668_v19 }
 0x250   : > { %v4757_v32 = vpop.eup %4756  ;;  %v1523_v17 = vmul.f32 %v4755_v16, %v4755_v16  ;;  %v1597_v13 = vmul.f32 %v4741_v55, %v5546_v11  ;;  %v1558_v59 = vmul.f32 %v5563_v2, %v1520_v9  ;;  %v1598_v34 = vmul.f32 %v5911_v44, %v5546_v11 }
 0x251   : > { %4293 = vmatprep.mubr.msk.f32.mxu0 %vm551_vm2, %v5976_v51  ;;  %4349 = vmatprep.mubr.msk.f32.mxu1 %vm551_vm2, %v5976_v51  ;;  %v5987_v54 = vadd.f32 %v5763_v38, %v1899_v12  ;;  %v1559_v37 = vmul.f32 %v5563_v2, %v1521_v20  ;;  %v5995_v50 = vadd.f32 %v5779_v18, %v1900_v63 }
 0x252   : > { %v1629_v55 = vadd.f32 %v1597_v13, %v1557_v61  ;;  %v1599_v9 = vmul.f32 %v5928_v48, %v5546_v11  ;;  %v1560_v27 = vmul.f32 %v5563_v2, %v1522_v60  ;;  %v1630_v38 = vadd.f32 %v1598_v34, %v1558_v59 }
 0x253   : > { %4294 = vmatmul.mubr.msk.f32.gmra.mrb[34].mxu0 %vm551_vm2, %v5987_v54  ;;  %4350 = vmatmul.mubr.msk.f32.gmra.mrb[66].mxu1 %vm551_vm2, %v5987_v54  ;;  %v1600_v44 = vmul.f32 %v4753_v10, %v5546_v11  ;;  %v1561_v4 = vmul.f32 %v5563_v2, %v1523_v17  ;;  %v1601_v52 = vmul.f32 %v4755_v16, %v5546_v11  ;;  %v2057_v17 = vpop.permute.xlu0 %2056 }
 0x254   : > { %4296 = vmatprep.mubr.msk.f32.mxu0 %vm551_vm2, %v5995_v50  ;;  %4352 = vmatprep.mubr.msk.f32.mxu1 %vm551_vm2, %v5995_v50  ;;  %v1669_v18 = vadd.f32 %v5587_v33, %v1629_v55  ;;  %v1631_v48 = vadd.f32 %v1599_v9, %v1559_v37  ;;  %v1670_v22 = vadd.f32 %v5587_v33, %v1630_v38  ;;  %v2062_v37 = vpop.permute.xlu1 %2061  ;;  %v4766_v55 = vld [vmem:[%s6374_s7 + $0x1] ss:$0 sm:$0xff] }
 0x255   : > { %v4759_v15 = vpop.eup %4758  ;;  %v1632_v45 = vadd.f32 %v1600_v44, %v1560_v27  ;;  %v1562_v49 = vmul.f32 %v5563_v2, %v1524_v14  ;;  %v1602_v46 = vmul.f32 %v4751_v53, %v5546_v11  ;;  %v1525_v57 = vmul.f32 %v4757_v32, %v4757_v32 }
 0x256   : > { %v4761_v40 = vpop.eup %4760  ;;  %v1901_v10 = vadd.f32 %v5775_v3, %v1669_v18  ;;  %v1671_v20 = vadd.f32 %v5587_v33, %v1631_v48  ;;  %v1633_v62 = vadd.f32 %v1601_v52, %v1561_v4  ;;  %v1528_v60 = vmul.f32 %v4759_v15, %v4759_v15 }
 0x257   : > { %v4763_v39 = vpop.eup %4762  ;;  %v1902_v19 = vadd.f32 %v5785_v35, %v1670_v22  ;;  %v1672_v61 = vadd.f32 %v5587_v33, %v1632_v45  ;;  %v1634_v16 = vadd.f32 %v1602_v46, %v1562_v49  ;;  %v1526_v63 = vmul.f32 %v4761_v40, %v4761_v40  ;;  %v1835_v52 = vpop.permute.xlu0 %1834  ;;  %v4768_v49 = vld [vmem:[%s6374_s7 + $0x3] ss:$0 sm:$0xff] }
 0x258   : > { %v4765_v12 = vpop.eup %4764  ;;  %v6020_v14 = vadd.f32 %v5782_v28, %v1901_v10  ;;  %v1903_v11 = vadd.f32 %v5788_v36, %v1671_v20  ;;  %v1673_v3 = vadd.f32 %v5587_v33, %v1633_v62  ;;  %v1529_v34 = vmul.f32 %v4763_v39, %v4763_v39  ;;  %v1840_v10 = vpop.permute.xlu1 %1839 }
 0x259   : > { %v1527_v53 = vmul.f32 %v4765_v12, %v4765_v12  ;;  %v6025_v13 = vadd.f32 %v5804_v29, %v1902_v19  ;;  %v1904_v59 = vadd.f32 %v5823_v25, %v1672_v61  ;;  %v1674_v35 = vadd.f32 %v5587_v33, %v1634_v16 }
 0x25a   : > { %4297 = vmatmul.mubr.msk.f32.gmra.mrb[36].mxu0 %vm551_vm2, %v6020_v14  ;;  %4353 = vmatmul.mubr.msk.f32.gmra.mrb[68].mxu1 %vm551_vm2, %v6020_v14  ;;  %v1905_v28 = vadd.f32 %v5826_v8, %v1673_v3  ;;  %v1563_v36 = vmul.f32 %v5563_v2, %v1525_v57  ;;  %v6040_v29 = vadd.f32 %v5808_v26, %v1903_v11 }
 0x25b   : > { %4299 = vmatprep.mubr.msk.f32.mxu0 %vm551_vm2, %v6025_v13  ;;  %4355 = vmatprep.mubr.msk.f32.mxu1 %vm551_vm2, %v6025_v13  ;;  %v6043_v25 = vadd.f32 %v5833_v56, %v1904_v59  ;;  %v1603_v8 = vmul.f32 %v4766_v55, %v4757_v32  ;;  %v1906_v9 = vadd.f32 %v5846_v47, %v1674_v35  ;;  %v4767_v56 = vld [vmem:[%s6374_s7] ss:$0 sm:$0xff] }
 0x25c   : > { %v1564_v27 = vmul.f32 %v5563_v2, %v1526_v63  ;;  %v1604_v38 = vmul.f32 %v4766_v55, %v4761_v40  ;;  %v1565_v44 = vmul.f32 %v5563_v2, %v1527_v53  ;;  %v6052_v4 = vadd.f32 %v5840_v24, %v1905_v28 }
 0x25d   : > { %v1635_v26 = vadd.f32 %v1603_v8, %v1563_v36  ;;  %v1605_v18 = vmul.f32 %v4766_v55, %v4765_v12  ;;  %v1566_v48 = vmul.f32 %v4767_v56, %v1528_v60  ;;  %v1606_v32 = vmul.f32 %v4766_v55, %v4759_v15  ;;  %v2067_v12 = vpop.permute.xlu0 %2066  ;;  %v6416_v8 = vld [vmem:[#allocation11_spill] sm:$0xff] }
 0x25e   : > { %4300 = vmatmul.mubr.msk.f32.gmra.mrb[38].mxu0 %vm551_vm2, %v6040_v29  ;;  %4356 = vmatmul.mubr.msk.f32.gmra.mrb[70].mxu1 %vm551_vm2, %v6040_v29  ;;  %v1636_v47 = vadd.f32 %v1604_v38, %v1564_v27  ;;  %v1567_v2 = vmul.f32 %v4767_v56, %v1529_v34  ;;  %v1607_v45 = vmul.f32 %v4766_v55, %v4763_v39  ;;  %v4769_v39 = vld [vmem:[%s6374_s7 + $0x4] ss:$0 sm:$0xff]  ;;  %v2072_v34 = vpop.permute.xlu1 %2071  ;;  %v6418_v27 = vld [vmem:[#allocation13_spill] sm:$0xff] }
 0x25f   : > { %4302 = vmatprep.mubr.msk.f32.mxu0 %vm551_vm2, %v6043_v25  ;;  %4358 = vmatprep.mubr.msk.f32.mxu1 %vm551_vm2, %v6043_v25  ;;  %v1675_v24 = vadd.f32 %v5587_v33, %v1635_v26  ;;  %v1637_v22 = vadd.f32 %v1605_v18, %v1565_v44  ;;  %v1876_v46 = vmul.f32 %v4768_v49, %v5992_v31  ;;  %v6415_v55 = vld [vmem:[#allocation10_spill] sm:$0xff]  ;;  %v6420_v44 = vld [vmem:[#allocation15_spill] sm:$0xff]  ;;  %v6424_v18 = vld [vmem:[#allocation4_spill] sm:$0xff] }
 0x260   : > { %v1877_v40 = vmul.f32 %v4768_v49, %v1830_v41  ;;  %v1676_v15 = vadd.f32 %v5587_v33, %v1636_v47  ;;  %v1638_v57 = vadd.f32 %v1606_v32, %v1566_v48  ;;  %v6072_v20 = vadd.f32 %v5867_v43, %v1906_v9  ;;  %v4770_v43 = vld [vmem:[%s6374_s7 + $0x2] ss:$0 sm:$0xff]  ;;  %v6417_v9 = vld [vmem:[#allocation12_spill] sm:$0xff] }
 0x261   : > { %v1907_v62 = vadd.f32 %v5863_v30, %v1675_v24  ;;  %v1677_v60 = vadd.f32 %v5587_v33, %v1637_v22  ;;  %v1639_v19 = vadd.f32 %v1607_v45, %v1567_v2  ;;  %v2108_v61 = vmul.f32 %v4769_v39, %v2057_v17  ;;  %v6419_v38 = vld [vmem:[#allocation14_spill] sm:$0xff] }
 0x262   : > { %4303 = vmatmul.mubr.msk.f32.gmra.mrb[40].mxu0 %vm551_vm2, %v6052_v4  ;;  %4359 = vmatmul.mubr.msk.f32.gmra.mrb[72].mxu1 %vm551_vm2, %v6052_v4  ;;  %v1908_v31 = vadd.f32 %v1876_v46, %v1676_v15  ;;  %v1678_v30 = vadd.f32 %v4770_v43, %v1638_v57  ;;  %v1878_v41 = vmul.f32 %v4768_v49, %v1835_v52  ;;  %v6423_v26 = vld [vmem:[#allocation6_spill] sm:$0xff] }
 0x263   : > { %4305 = vmatprep.mubr.msk.f32.mxu0 %vm551_vm2, %v6072_v20  ;;  %4361 = vmatprep.mubr.msk.f32.mxu1 %vm551_vm2, %v6072_v20  ;;  %v1909_v33 = vadd.f32 %v1877_v40, %v1677_v60  ;;  %v2109_v16 = vmul.f32 %v4769_v39, %v2062_v37  ;;  %v2139_v17 = vadd.f32 %v5920_v42, %v1907_v62 }
 0x264   : > { %v2140_v63 = vadd.f32 %v2108_v61, %v1908_v31  ;;  %v1679_v11 = vadd.f32 %v4770_v43, %v1639_v19  ;;  %v1910_v3 = vadd.f32 %v1878_v41, %v1678_v30  ;;  %v1879_v53 = vmul.f32 %v4768_v49, %v1840_v10 }
 0x265   : > { %v2141_v59 = vadd.f32 %v2109_v16, %v1909_v33  ;;  %v2110_v35 = vmul.f32 %v4769_v39, %v2067_v12  ;;  %v2111_v37 = vmul.f32 %v4769_v39, %v2072_v34 }
 0x266   : > { %4306 = vmatmul.mubr.msk.f32.gmra.mrb[42].mxu0 %vm551_vm2, %v2139_v17  ;;  %4362 = vmatmul.mubr.msk.f32.gmra.mrb[74].mxu1 %vm551_vm2, %v2139_v17  ;;  %v1911_v28 = vadd.f32 %v1879_v53, %v1679_v11 }
 0x267   : > { %4308 = vmatprep.mubr.msk.f32.mxu0 %vm551_vm2, %v2140_v63  ;;  %4364 = vmatprep.mubr.msk.f32.mxu1 %vm551_vm2, %v2140_v63  ;;  %v2142_v36 = vadd.f32 %v2110_v35, %v1910_v3 }
 0x268   : > { %v2143_v42 = vadd.f32 %v2111_v37, %v1911_v28 }
 0x26a   : > { %4309 = vmatmul.mubr.msk.f32.gmra.mrb[44].mxu0 %vm551_vm2, %v2141_v59  ;;  %4365 = vmatmul.mubr.msk.f32.gmra.mrb[76].mxu1 %vm551_vm2, %v2141_v59 }
 0x26b   : > { %4311 = vmatprep.mubr.msk.f32.mxu0 %vm551_vm2, %v2142_v36  ;;  %4367 = vmatprep.mubr.msk.f32.mxu1 %vm551_vm2, %v2142_v36 }
 0x26e   : > { %4312 = vmatmul.mubr.msk.f32.gmra.mrb[46].mxu0 %vm551_vm2, %v2143_v42  ;;  %4368 = vmatmul.mubr.msk.f32.gmra.mrb[78].mxu1 %vm551_vm2, %v2143_v42 }
 0x26f   : > { %4378 = vmatprep.mubr.msk.f32.mxu0 %vm551_vm2, %v5625_v58  ;;  %v6421_v58 = vld [vmem:[#allocation9_spill] sm:$0xff] }
 0x272   : > { %4379 = vmatmul.mubr.msk.f32.vlgmr.msra.gmra.mrb[48].mxu0 %vm551_vm2, %v5633_v5  ;;  %v6422_v5 = vld [vmem:[#allocation2_spill] sm:$0xff] }
 0x273   : > { %4381 = vmatprep.mubr.msk.f32.mxu0 %vm551_vm2, %v6415_v55 }
 0x276   : > { %4382 = vmatmul.mubr.msk.f32.gmra.mrb[50].mxu0 %vm551_vm2, %v6416_v8 }
 0x277   : > { %4384 = vmatprep.mubr.msk.f32.mxu0 %vm551_vm2, %v6417_v9 }
 0x27a   : > { %4385 = vmatmul.mubr.msk.f32.gmra.mrb[52].mxu0 %vm551_vm2, %v6418_v27 }
 0x27b   : > { %4387 = vmatprep.mubr.msk.f32.mxu0 %vm551_vm2, %v6419_v38 }
 0x27e   : > { %4388 = vmatmul.mubr.msk.f32.gmra.mrb[54].mxu0 %vm551_vm2, %v6420_v44 }
 0x27f   : > { %4390 = vmatprep.mubr.msk.f32.mxu0 %vm551_vm2, %v6421_v58 }
 0x282   : > { %4391 = vmatmul.mubr.msk.f32.gmra.mrb[56].mxu0 %vm551_vm2, %v6422_v5 }
 0x283   : > { %4393 = vmatprep.mubr.msk.f32.mxu0 %vm551_vm2, %v6423_v26 }
 0x286   : > { %4394 = vmatmul.mubr.msk.f32.gmra.mrb[58].mxu0 %vm551_vm2, %v6424_v18 }
 0x287   : > { %4396 = vmatprep.mubr.msk.f32.mxu0 %vm551_vm2, %v5896_v7 }
 0x28a   : > { %4397 = vmatmul.mubr.msk.f32.gmra.mrb[60].mxu0 %vm551_vm2, %v5908_v0 }
 0x28b   : > { %4399 = vmatprep.mubr.msk.f32.mxu0 %vm551_vm2, %v5914_v6 }
 0x28e   : > { %4400 = vmatmul.mubr.msk.f32.gmra.mrb[62].mxu0 %vm551_vm2, %v5937_v23 }
 0x28f   : > { %4402 = vmatprep.mubr.msk.f32.mxu0 %vm551_vm2, %v5956_v21 }
 0x292   : > { %4403 = vmatmul.mubr.msk.f32.gmra.mrb[64].mxu0 %vm551_vm2, %v5959_v1 }
 0x293   : > { %4405 = vmatprep.mubr.msk.f32.mxu0 %vm551_vm2, %v5976_v51 }
 0x296   : > { %4406 = vmatmul.mubr.msk.f32.gmra.mrb[66].mxu0 %vm551_vm2, %v5987_v54 }
 0x297   : > { %4408 = vmatprep.mubr.msk.f32.mxu0 %vm551_vm2, %v5995_v50 }
 0x29a   : > { %4409 = vmatmul.mubr.msk.f32.gmra.mrb[68].mxu0 %vm551_vm2, %v6020_v14 }
 0x29b   : > { %4411 = vmatprep.mubr.msk.f32.mxu0 %vm551_vm2, %v6025_v13 }
 0x29e   : > { %4412 = vmatmul.mubr.msk.f32.gmra.mrb[70].mxu0 %vm551_vm2, %v6040_v29 }
 0x29f   : > { %4414 = vmatprep.mubr.msk.f32.mxu0 %vm551_vm2, %v6043_v25 }
 0x2a2   : > { %4415 = vmatmul.mubr.msk.f32.gmra.mrb[72].mxu0 %vm551_vm2, %v6052_v4 }
 0x2a3   : > { %4417 = vmatprep.mubr.msk.f32.mxu0 %vm551_vm2, %v6072_v20 }
 0x2a6   : > { %4418 = vmatmul.mubr.msk.f32.gmra.mrb[74].mxu0 %vm551_vm2, %v2139_v17 }
 0x2a7   : > { %4420 = vmatprep.mubr.msk.f32.mxu0 %vm551_vm2, %v2140_v63 }
 0x2aa   : > { %4421 = vmatmul.mubr.msk.f32.gmra.mrb[76].mxu0 %vm551_vm2, %v2141_v59 }
 0x2ab   : > { %4423 = vmatprep.mubr.msk.f32.mxu0 %vm551_vm2, %v2142_v36 }
 0x2ae   : > { %4424 = vmatmul.mubr.msk.f32.gmra.mrb[78].mxu0 %vm551_vm2, %v2143_v42 }
 0x2e3   : > { %v4268_v7 = vpop.f32.mrb[16].mxu0  ;;  %v4324_v0 = vpop.f32.mrb[48].mxu1 }
 0x2e4   : > { %v3947_v6 = vpack.c.bf16 %v4268_v7, %v4268_v7  ;;  %v3979_v23 = vpack.c.bf16 %v4324_v0, %v4324_v0  ;;  %v2314_v21 = vpop.f32.mrb[17].mxu0  ;;  %v2708_v1 = vpop.f32.mrb[49].mxu1 }
 0x2e5   : > { %v3946_v51 = vpack.c.bf16 %v2314_v21, %v2314_v21  ;;  %v3978_v54 = vpack.c.bf16 %v2708_v1, %v2708_v1 }
 0x2e6   : > { %2603 = vst.msk [vmem:[%s6164_s18 + $0x4] sm:$0xf] %vm2601_vm7, %v3947_v6  ;;  %3811 = vst.msk [vmem:[%s6164_s18 + $0x84] sm:$0xf] %vm2601_vm7, %v3979_v23 }
 0x2e7   : > { %2602 = vst.msk [vmem:[%s6164_s18] sm:$0xf] %vm2601_vm7, %v3946_v51  ;;  %3810 = vst.msk [vmem:[%s6164_s18 + $0x80] sm:$0xf] %vm2601_vm7, %v3978_v54  ;;  %v4271_v50 = vpop.f32.mrb[18].mxu0  ;;  %v4327_v14 = vpop.f32.mrb[50].mxu1 }
 0x2e8   : > { %v3949_v13 = vpack.c.bf16 %v4271_v50, %v4271_v50  ;;  %v3981_v29 = vpack.c.bf16 %v4327_v14, %v4327_v14  ;;  %v2324_v25 = vpop.f32.mrb[19].mxu0  ;;  %v2718_v4 = vpop.f32.mrb[51].mxu1 }
 0x2e9   : > { %v3948_v56 = vpack.c.bf16 %v2324_v25, %v2324_v25  ;;  %v3980_v48 = vpack.c.bf16 %v2718_v4, %v2718_v4 }
 0x2ea   : > { %2605 = vst.msk [vmem:[%s6164_s18 + $0xc] sm:$0xf] %vm2601_vm7, %v3949_v13  ;;  %3813 = vst.msk [vmem:[%s6164_s18 + $0x8c] sm:$0xf] %vm2601_vm7, %v3981_v29 }
 0x2eb   : > { %2604 = vst.msk [vmem:[%s6164_s18 + $0x8] sm:$0xf] %vm2601_vm7, %v3948_v56  ;;  %3812 = vst.msk [vmem:[%s6164_s18 + $0x88] sm:$0xf] %vm2601_vm7, %v3980_v48 }
 0x2ec   : > { %v4274_v52 = vpop.f32.mrb[20].mxu0  ;;  %v4330_v47 = vpop.f32.mrb[52].mxu1 }
 0x2ed   : > { %v3951_v32 = vpack.c.bf16 %v4274_v52, %v4274_v52  ;;  %v3983_v2 = vpack.c.bf16 %v4330_v47, %v4330_v47  ;;  %v2334_v24 = vpop.f32.mrb[21].mxu0  ;;  %v2728_v22 = vpop.f32.mrb[53].mxu1 }
 0x2ee   : > { %v3950_v45 = vpack.c.bf16 %v2334_v24, %v2334_v24  ;;  %v3982_v49 = vpack.c.bf16 %v2728_v22, %v2728_v22 }
 0x2ef   : > { %2607 = vst.msk [vmem:[%s6164_s18 + $0x14] sm:$0xf] %vm2601_vm7, %v3951_v32  ;;  %3815 = vst.msk [vmem:[%s6164_s18 + $0x94] sm:$0xf] %vm2601_vm7, %v3983_v2 }
 0x2f0   : > { %2606 = vst.msk [vmem:[%s6164_s18 + $0x10] sm:$0xf] %vm2601_vm7, %v3950_v45  ;;  %3814 = vst.msk [vmem:[%s6164_s18 + $0x90] sm:$0xf] %vm2601_vm7, %v3982_v49  ;;  %v4277_v46 = vpop.f32.mrb[22].mxu0  ;;  %v4333_v40 = vpop.f32.mrb[54].mxu1 }
 0x2f1   : > { %v3953_v15 = vpack.c.bf16 %v4277_v46, %v4277_v46  ;;  %v3985_v57 = vpack.c.bf16 %v4333_v40, %v4333_v40  ;;  %v2344_v10 = vpop.f32.mrb[23].mxu0  ;;  %v2738_v20 = vpop.f32.mrb[55].mxu1 }
 0x2f2   : > { %v3952_v62 = vpack.c.bf16 %v2344_v10, %v2344_v10  ;;  %v3984_v60 = vpack.c.bf16 %v2738_v20, %v2738_v20 }
 0x2f3   : > { %2609 = vst.msk [vmem:[%s6164_s18 + $0x1c] sm:$0xf] %vm2601_vm7, %v3953_v15  ;;  %3817 = vst.msk [vmem:[%s6164_s18 + $0x9c] sm:$0xf] %vm2601_vm7, %v3985_v57 }
 0x2f4   : > { %2608 = vst.msk [vmem:[%s6164_s18 + $0x18] sm:$0xf] %vm2601_vm7, %v3952_v62  ;;  %3816 = vst.msk [vmem:[%s6164_s18 + $0x98] sm:$0xf] %vm2601_vm7, %v3984_v60 }
 0x302   : > { %v4280_v19 = vpop.f32.mrb[24].mxu0  ;;  %v4336_v39 = vpop.f32.mrb[56].mxu1 }
 0x303   : > { %v3955_v61 = vpack.c.bf16 %v4280_v19, %v4280_v19  ;;  %v3987_v31 = vpack.c.bf16 %v4336_v39, %v4336_v39  ;;  %v2354_v43 = vpop.f32.mrb[25].mxu0  ;;  %v2748_v30 = vpop.f32.mrb[57].mxu1 }
 0x304   : > { %v3954_v41 = vpack.c.bf16 %v2354_v43, %v2354_v43  ;;  %v3986_v33 = vpack.c.bf16 %v2748_v30, %v2748_v30 }
 0x305   : > { %2611 = vst.msk [vmem:[%s6164_s18 + $0x24] sm:$0xf] %vm2601_vm7, %v3955_v61  ;;  %3819 = vst.msk [vmem:[%s6164_s18 + $0xa4] sm:$0xf] %vm2601_vm7, %v3987_v31 }
 0x306   : > { %2610 = vst.msk [vmem:[%s6164_s18 + $0x20] sm:$0xf] %vm2601_vm7, %v3954_v41  ;;  %3818 = vst.msk [vmem:[%s6164_s18 + $0xa0] sm:$0xf] %vm2601_vm7, %v3986_v33  ;;  %v4283_v16 = vpop.f32.mrb[26].mxu0  ;;  %v4339_v12 = vpop.f32.mrb[58].mxu1 }
 0x307   : > { %v3957_v17 = vpack.c.bf16 %v4283_v16, %v4283_v16  ;;  %v3989_v63 = vpack.c.bf16 %v4339_v12, %v4339_v12  ;;  %v2364_v11 = vpop.f32.mrb[27].mxu0  ;;  %v2758_v3 = vpop.f32.mrb[59].mxu1 }
 0x308   : > { %v3956_v53 = vpack.c.bf16 %v2364_v11, %v2364_v11  ;;  %v3988_v59 = vpack.c.bf16 %v2758_v3, %v2758_v3 }
 0x309   : > { %2613 = vst.msk [vmem:[%s6164_s18 + $0x2c] sm:$0xf] %vm2601_vm7, %v3957_v17  ;;  %3821 = vst.msk [vmem:[%s6164_s18 + $0xac] sm:$0xf] %vm2601_vm7, %v3989_v63 }
 0x30a   : > { %2612 = vst.msk [vmem:[%s6164_s18 + $0x28] sm:$0xf] %vm2601_vm7, %v3956_v53  ;;  %3820 = vst.msk [vmem:[%s6164_s18 + $0xa8] sm:$0xf] %vm2601_vm7, %v3988_v59 }
 0x318   : > { %v4286_v35 = vpop.f32.mrb[28].mxu0  ;;  %v4342_v34 = vpop.f32.mrb[60].mxu1 }
 0x319   : > { %v3959_v28 = vpack.c.bf16 %v4286_v35, %v4286_v35  ;;  %v3991_v36 = vpack.c.bf16 %v4342_v34, %v4342_v34  ;;  %v2374_v37 = vpop.f32.mrb[29].mxu0  ;;  %v2768_v42 = vpop.f32.mrb[61].mxu1 }
 0x31a   : > { %v3958_v55 = vpack.c.bf16 %v2374_v37, %v2374_v37  ;;  %v3990_v8 = vpack.c.bf16 %v2768_v42, %v2768_v42 }
 0x31b   : > { %2615 = vst.msk [vmem:[%s6164_s18 + $0x34] sm:$0xf] %vm2601_vm7, %v3959_v28  ;;  %3823 = vst.msk [vmem:[%s6164_s18 + $0xb4] sm:$0xf] %vm2601_vm7, %v3991_v36 }
 0x31c   : > { %2614 = vst.msk [vmem:[%s6164_s18 + $0x30] sm:$0xf] %vm2601_vm7, %v3958_v55  ;;  %3822 = vst.msk [vmem:[%s6164_s18 + $0xb0] sm:$0xf] %vm2601_vm7, %v3990_v8  ;;  %v4289_v9 = vpop.f32.mrb[30].mxu0  ;;  %v4345_v27 = vpop.f32.mrb[62].mxu1 }
 0x31d   : > { %v3961_v38 = vpack.c.bf16 %v4289_v9, %v4289_v9  ;;  %v3993_v44 = vpack.c.bf16 %v4345_v27, %v4345_v27  ;;  %v2384_v58 = vpop.f32.mrb[31].mxu0  ;;  %v2778_v5 = vpop.f32.mrb[63].mxu1 }
 0x31e   : > { %v3960_v26 = vpack.c.bf16 %v2384_v58, %v2384_v58  ;;  %v3992_v18 = vpack.c.bf16 %v2778_v5, %v2778_v5 }
 0x31f   : > { %2617 = vst.msk [vmem:[%s6164_s18 + $0x3c] sm:$0xf] %vm2601_vm7, %v3961_v38  ;;  %3825 = vst.msk [vmem:[%s6164_s18 + $0xbc] sm:$0xf] %vm2601_vm7, %v3993_v44 }
 0x320   : > { %2616 = vst.msk [vmem:[%s6164_s18 + $0x38] sm:$0xf] %vm2601_vm7, %v3960_v26  ;;  %3824 = vst.msk [vmem:[%s6164_s18 + $0xb8] sm:$0xf] %vm2601_vm7, %v3992_v18 }
 0x322   : > { %v4292_v7 = vpop.f32.mrb[32].mxu0  ;;  %v4348_v0 = vpop.f32.mrb[64].mxu1 }
 0x323   : > { %v3963_v6 = vpack.c.bf16 %v4292_v7, %v4292_v7  ;;  %v3995_v23 = vpack.c.bf16 %v4348_v0, %v4348_v0  ;;  %v2394_v21 = vpop.f32.mrb[33].mxu0  ;;  %v2788_v1 = vpop.f32.mrb[65].mxu1 }
 0x324   : > { %v3962_v51 = vpack.c.bf16 %v2394_v21, %v2394_v21  ;;  %v3994_v54 = vpack.c.bf16 %v2788_v1, %v2788_v1 }
 0x325   : > { %2619 = vst.msk [vmem:[%s6164_s18 + $0x44] sm:$0xf] %vm2601_vm7, %v3963_v6  ;;  %3827 = vst.msk [vmem:[%s6164_s18 + $0xc4] sm:$0xf] %vm2601_vm7, %v3995_v23 }
 0x326   : > { %2618 = vst.msk [vmem:[%s6164_s18 + $0x40] sm:$0xf] %vm2601_vm7, %v3962_v51  ;;  %3826 = vst.msk [vmem:[%s6164_s18 + $0xc0] sm:$0xf] %vm2601_vm7, %v3994_v54  ;;  %v4295_v50 = vpop.f32.mrb[34].mxu0  ;;  %v4351_v14 = vpop.f32.mrb[66].mxu1 }
 0x327   : > { %v3965_v13 = vpack.c.bf16 %v4295_v50, %v4295_v50  ;;  %v3997_v29 = vpack.c.bf16 %v4351_v14, %v4351_v14  ;;  %v2404_v25 = vpop.f32.mrb[35].mxu0  ;;  %v2798_v4 = vpop.f32.mrb[67].mxu1 }
 0x328   : > { %v3964_v56 = vpack.c.bf16 %v2404_v25, %v2404_v25  ;;  %v3996_v48 = vpack.c.bf16 %v2798_v4, %v2798_v4 }
 0x329   : > { %2621 = vst.msk [vmem:[%s6164_s18 + $0x4c] sm:$0xf] %vm2601_vm7, %v3965_v13  ;;  %3829 = vst.msk [vmem:[%s6164_s18 + $0xcc] sm:$0xf] %vm2601_vm7, %v3997_v29 }
 0x32a   : > { %2620 = vst.msk [vmem:[%s6164_s18 + $0x48] sm:$0xf] %vm2601_vm7, %v3964_v56  ;;  %3828 = vst.msk [vmem:[%s6164_s18 + $0xc8] sm:$0xf] %vm2601_vm7, %v3996_v48 }
 0x32d   : > { %v4298_v52 = vpop.f32.mrb[36].mxu0  ;;  %v4354_v47 = vpop.f32.mrb[68].mxu1 }
 0x32e   : > { %v3967_v32 = vpack.c.bf16 %v4298_v52, %v4298_v52  ;;  %v3999_v2 = vpack.c.bf16 %v4354_v47, %v4354_v47  ;;  %v2414_v24 = vpop.f32.mrb[37].mxu0  ;;  %v2808_v22 = vpop.f32.mrb[69].mxu1 }
 0x32f   : > { %v3966_v45 = vpack.c.bf16 %v2414_v24, %v2414_v24  ;;  %v3998_v49 = vpack.c.bf16 %v2808_v22, %v2808_v22 }
 0x330   : > { %2623 = vst.msk [vmem:[%s6164_s18 + $0x54] sm:$0xf] %vm2601_vm7, %v3967_v32  ;;  %3831 = vst.msk [vmem:[%s6164_s18 + $0xd4] sm:$0xf] %vm2601_vm7, %v3999_v2 }
 0x331   : > { %2622 = vst.msk [vmem:[%s6164_s18 + $0x50] sm:$0xf] %vm2601_vm7, %v3966_v45  ;;  %3830 = vst.msk [vmem:[%s6164_s18 + $0xd0] sm:$0xf] %vm2601_vm7, %v3998_v49  ;;  %v4301_v46 = vpop.f32.mrb[38].mxu0  ;;  %v4357_v40 = vpop.f32.mrb[70].mxu1 }
 0x332   : > { %v3969_v15 = vpack.c.bf16 %v4301_v46, %v4301_v46  ;;  %v4001_v57 = vpack.c.bf16 %v4357_v40, %v4357_v40  ;;  %v2424_v10 = vpop.f32.mrb[39].mxu0  ;;  %v2818_v20 = vpop.f32.mrb[71].mxu1 }
 0x333   : > { %v3968_v62 = vpack.c.bf16 %v2424_v10, %v2424_v10  ;;  %v4000_v60 = vpack.c.bf16 %v2818_v20, %v2818_v20 }
 0x334   : > { %2625 = vst.msk [vmem:[%s6164_s18 + $0x5c] sm:$0xf] %vm2601_vm7, %v3969_v15  ;;  %3833 = vst.msk [vmem:[%s6164_s18 + $0xdc] sm:$0xf] %vm2601_vm7, %v4001_v57 }
 0x335   : > { %2624 = vst.msk [vmem:[%s6164_s18 + $0x58] sm:$0xf] %vm2601_vm7, %v3968_v62  ;;  %3832 = vst.msk [vmem:[%s6164_s18 + $0xd8] sm:$0xf] %vm2601_vm7, %v4000_v60  ;;  %v4304_v19 = vpop.f32.mrb[40].mxu0  ;;  %v4360_v39 = vpop.f32.mrb[72].mxu1 }
 0x336   : > { %v3971_v61 = vpack.c.bf16 %v4304_v19, %v4304_v19  ;;  %v4003_v31 = vpack.c.bf16 %v4360_v39, %v4360_v39  ;;  %v2434_v43 = vpop.f32.mrb[41].mxu0  ;;  %v2828_v30 = vpop.f32.mrb[73].mxu1 }
 0x337   : > { %v3970_v41 = vpack.c.bf16 %v2434_v43, %v2434_v43  ;;  %v4002_v33 = vpack.c.bf16 %v2828_v30, %v2828_v30 }
 0x338   : > { %2627 = vst.msk [vmem:[%s6164_s18 + $0x64] sm:$0xf] %vm2601_vm7, %v3971_v61  ;;  %3835 = vst.msk [vmem:[%s6164_s18 + $0xe4] sm:$0xf] %vm2601_vm7, %v4003_v31 }
 0x339   : > { %2626 = vst.msk [vmem:[%s6164_s18 + $0x60] sm:$0xf] %vm2601_vm7, %v3970_v41  ;;  %3834 = vst.msk [vmem:[%s6164_s18 + $0xe0] sm:$0xf] %vm2601_vm7, %v4002_v33  ;;  %v4307_v16 = vpop.f32.mrb[42].mxu0  ;;  %v4363_v12 = vpop.f32.mrb[74].mxu1 }
 0x33a   : > { %v3973_v17 = vpack.c.bf16 %v4307_v16, %v4307_v16  ;;  %v4005_v63 = vpack.c.bf16 %v4363_v12, %v4363_v12  ;;  %v2444_v11 = vpop.f32.mrb[43].mxu0  ;;  %v2838_v3 = vpop.f32.mrb[75].mxu1 }
 0x33b   : > { %v3972_v53 = vpack.c.bf16 %v2444_v11, %v2444_v11  ;;  %v4004_v59 = vpack.c.bf16 %v2838_v3, %v2838_v3 }
 0x33c   : > { %2629 = vst.msk [vmem:[%s6164_s18 + $0x6c] sm:$0xf] %vm2601_vm7, %v3973_v17  ;;  %3837 = vst.msk [vmem:[%s6164_s18 + $0xec] sm:$0xf] %vm2601_vm7, %v4005_v63 }
 0x33d   : > { %2628 = vst.msk [vmem:[%s6164_s18 + $0x68] sm:$0xf] %vm2601_vm7, %v3972_v53  ;;  %3836 = vst.msk [vmem:[%s6164_s18 + $0xe8] sm:$0xf] %vm2601_vm7, %v4004_v59  ;;  %v4310_v35 = vpop.f32.mrb[44].mxu0  ;;  %v4366_v34 = vpop.f32.mrb[76].mxu1 }
 0x33e   : > { %v3975_v28 = vpack.c.bf16 %v4310_v35, %v4310_v35  ;;  %v4007_v36 = vpack.c.bf16 %v4366_v34, %v4366_v34  ;;  %v2454_v37 = vpop.f32.mrb[45].mxu0  ;;  %v2848_v42 = vpop.f32.mrb[77].mxu1 }
 0x33f   : > { %v3974_v55 = vpack.c.bf16 %v2454_v37, %v2454_v37  ;;  %v4006_v8 = vpack.c.bf16 %v2848_v42, %v2848_v42 }
 0x340   : > { %2631 = vst.msk [vmem:[%s6164_s18 + $0x74] sm:$0xf] %vm2601_vm7, %v3975_v28  ;;  %3839 = vst.msk [vmem:[%s6164_s18 + $0xf4] sm:$0xf] %vm2601_vm7, %v4007_v36 }
 0x341   : > { %2630 = vst.msk [vmem:[%s6164_s18 + $0x70] sm:$0xf] %vm2601_vm7, %v3974_v55  ;;  %3838 = vst.msk [vmem:[%s6164_s18 + $0xf0] sm:$0xf] %vm2601_vm7, %v4006_v8  ;;  %v4313_v9 = vpop.f32.mrb[46].mxu0  ;;  %v4369_v27 = vpop.f32.mrb[78].mxu1 }
 0x342   : > { %v3977_v38 = vpack.c.bf16 %v4313_v9, %v4313_v9  ;;  %v4009_v44 = vpack.c.bf16 %v4369_v27, %v4369_v27  ;;  %v2464_v58 = vpop.f32.mrb[47].mxu0  ;;  %v2858_v5 = vpop.f32.mrb[79].mxu1 }
 0x343   : > { %v3976_v26 = vpack.c.bf16 %v2464_v58, %v2464_v58  ;;  %v4008_v18 = vpack.c.bf16 %v2858_v5, %v2858_v5 }
 0x344   : > { %2633 = vst.msk [vmem:[%s6164_s18 + $0x7c] sm:$0xf] %vm2601_vm7, %v3977_v38  ;;  %3841 = vst.msk [vmem:[%s6164_s18 + $0xfc] sm:$0xf] %vm2601_vm7, %v4009_v44 }
 0x345   : > { %2632 = vst.msk [vmem:[%s6164_s18 + $0x78] sm:$0xf] %vm2601_vm7, %v3976_v26  ;;  %3840 = vst.msk [vmem:[%s6164_s18 + $0xf8] sm:$0xf] %vm2601_vm7, %v4008_v18  ;;  %v4380_v7 = vpop.f32.mrb[48].mxu0 }
 0x346   : > { %v4011_v0 = vpack.c.bf16 %v4380_v7, %v4380_v7  ;;  %v3102_v6 = vpop.f32.mrb[49].mxu0 }
 0x347   : > { %v4010_v23 = vpack.c.bf16 %v3102_v6, %v3102_v6 }
 0x348   : > { %3912 = vst.msk [vmem:[%s6164_s18 + $0x104] sm:$0xf] %vm2601_vm7, %v4011_v0 }
 0x349   : > { %3911 = vst.msk [vmem:[%s6164_s18 + $0x100] sm:$0xf] %vm2601_vm7, %v4010_v23  ;;  %v4383_v21 = vpop.f32.mrb[50].mxu0 }
 0x34a   : > { %v4013_v1 = vpack.c.bf16 %v4383_v21, %v4383_v21  ;;  %v3112_v51 = vpop.f32.mrb[51].mxu0 }
 0x34b   : > { %v4012_v54 = vpack.c.bf16 %v3112_v51, %v3112_v51 }
 0x34c   : > { %3914 = vst.msk [vmem:[%s6164_s18 + $0x10c] sm:$0xf] %vm2601_vm7, %v4013_v1 }
 0x34d   : > { %3913 = vst.msk [vmem:[%s6164_s18 + $0x108] sm:$0xf] %vm2601_vm7, %v4012_v54  ;;  %v4386_v50 = vpop.f32.mrb[52].mxu0 }
 0x34e   : > { %v4015_v14 = vpack.c.bf16 %v4386_v50, %v4386_v50  ;;  %v3122_v13 = vpop.f32.mrb[53].mxu0 }
 0x34f   : > { %v4014_v29 = vpack.c.bf16 %v3122_v13, %v3122_v13 }
 0x350   : > { %3916 = vst.msk [vmem:[%s6164_s18 + $0x114] sm:$0xf] %vm2601_vm7, %v4015_v14 }
 0x351   : > { %3915 = vst.msk [vmem:[%s6164_s18 + $0x110] sm:$0xf] %vm2601_vm7, %v4014_v29  ;;  %v4389_v25 = vpop.f32.mrb[54].mxu0 }
 0x352   : > { %v4017_v4 = vpack.c.bf16 %v4389_v25, %v4389_v25  ;;  %v3132_v56 = vpop.f32.mrb[55].mxu0 }
 0x353   : > { %v4016_v48 = vpack.c.bf16 %v3132_v56, %v3132_v56 }
 0x354   : > { %3918 = vst.msk [vmem:[%s6164_s18 + $0x11c] sm:$0xf] %vm2601_vm7, %v4017_v4 }
 0x355   : > { %3917 = vst.msk [vmem:[%s6164_s18 + $0x118] sm:$0xf] %vm2601_vm7, %v4016_v48  ;;  %v4392_v52 = vpop.f32.mrb[56].mxu0 }
 0x356   : > { %v4019_v47 = vpack.c.bf16 %v4392_v52, %v4392_v52  ;;  %v3142_v32 = vpop.f32.mrb[57].mxu0 }
 0x357   : > { %v4018_v2 = vpack.c.bf16 %v3142_v32, %v3142_v32 }
 0x358   : > { %3920 = vst.msk [vmem:[%s6164_s18 + $0x124] sm:$0xf] %vm2601_vm7, %v4019_v47 }
 0x359   : > { %3919 = vst.msk [vmem:[%s6164_s18 + $0x120] sm:$0xf] %vm2601_vm7, %v4018_v2  ;;  %v4395_v24 = vpop.f32.mrb[58].mxu0 }
 0x35a   : > { %v4021_v22 = vpack.c.bf16 %v4395_v24, %v4395_v24  ;;  %v3152_v45 = vpop.f32.mrb[59].mxu0 }
 0x35b   : > { %v4020_v49 = vpack.c.bf16 %v3152_v45, %v3152_v45 }
 0x35c   : > { %3922 = vst.msk [vmem:[%s6164_s18 + $0x12c] sm:$0xf] %vm2601_vm7, %v4021_v22 }
 0x35d   : > { %3921 = vst.msk [vmem:[%s6164_s18 + $0x128] sm:$0xf] %vm2601_vm7, %v4020_v49  ;;  %v4398_v46 = vpop.f32.mrb[60].mxu0 }
 0x35e   : > { %v4023_v40 = vpack.c.bf16 %v4398_v46, %v4398_v46  ;;  %v3162_v15 = vpop.f32.mrb[61].mxu0 }
 0x35f   : > { %v4022_v57 = vpack.c.bf16 %v3162_v15, %v3162_v15 }
 0x360   : > { %3924 = vst.msk [vmem:[%s6164_s18 + $0x134] sm:$0xf] %vm2601_vm7, %v4023_v40 }
 0x361   : > { %3923 = vst.msk [vmem:[%s6164_s18 + $0x130] sm:$0xf] %vm2601_vm7, %v4022_v57  ;;  %v4401_v10 = vpop.f32.mrb[62].mxu0 }
 0x362   : > { %v4025_v20 = vpack.c.bf16 %v4401_v10, %v4401_v10  ;;  %v3172_v62 = vpop.f32.mrb[63].mxu0 }
 0x363   : > { %v4024_v60 = vpack.c.bf16 %v3172_v62, %v3172_v62 }
 0x364   : > { %3926 = vst.msk [vmem:[%s6164_s18 + $0x13c] sm:$0xf] %vm2601_vm7, %v4025_v20 }
 0x365   : > { %3925 = vst.msk [vmem:[%s6164_s18 + $0x138] sm:$0xf] %vm2601_vm7, %v4024_v60  ;;  %v4404_v19 = vpop.f32.mrb[64].mxu0 }
 0x366   : > { %v4027_v39 = vpack.c.bf16 %v4404_v19, %v4404_v19  ;;  %v3182_v61 = vpop.f32.mrb[65].mxu0 }
 0x367   : > { %v4026_v31 = vpack.c.bf16 %v3182_v61, %v3182_v61 }
 0x368   : > { %3928 = vst.msk [vmem:[%s6164_s18 + $0x144] sm:$0xf] %vm2601_vm7, %v4027_v39 }
 0x369   : > { %3927 = vst.msk [vmem:[%s6164_s18 + $0x140] sm:$0xf] %vm2601_vm7, %v4026_v31  ;;  %v4407_v43 = vpop.f32.mrb[66].mxu0 }
 0x36a   : > { %v4029_v30 = vpack.c.bf16 %v4407_v43, %v4407_v43  ;;  %v3192_v41 = vpop.f32.mrb[67].mxu0 }
 0x36b   : > { %v4028_v33 = vpack.c.bf16 %v3192_v41, %v3192_v41 }
 0x36c   : > { %3930 = vst.msk [vmem:[%s6164_s18 + $0x14c] sm:$0xf] %vm2601_vm7, %v4029_v30 }
 0x36d   : > { %3929 = vst.msk [vmem:[%s6164_s18 + $0x148] sm:$0xf] %vm2601_vm7, %v4028_v33  ;;  %v4410_v16 = vpop.f32.mrb[68].mxu0 }
 0x36e   : > { %v4031_v12 = vpack.c.bf16 %v4410_v16, %v4410_v16  ;;  %v3202_v17 = vpop.f32.mrb[69].mxu0 }
 0x36f   : > { %v4030_v63 = vpack.c.bf16 %v3202_v17, %v3202_v17 }
 0x370   : > { %3932 = vst.msk [vmem:[%s6164_s18 + $0x154] sm:$0xf] %vm2601_vm7, %v4031_v12 }
 0x371   : > { %3931 = vst.msk [vmem:[%s6164_s18 + $0x150] sm:$0xf] %vm2601_vm7, %v4030_v63  ;;  %v4413_v11 = vpop.f32.mrb[70].mxu0 }
 0x372   : > { %v4033_v3 = vpack.c.bf16 %v4413_v11, %v4413_v11  ;;  %v3212_v53 = vpop.f32.mrb[71].mxu0 }
 0x373   : > { %v4032_v59 = vpack.c.bf16 %v3212_v53, %v3212_v53 }
 0x374   : > { %3934 = vst.msk [vmem:[%s6164_s18 + $0x15c] sm:$0xf] %vm2601_vm7, %v4033_v3 }
 0x375   : > { %3933 = vst.msk [vmem:[%s6164_s18 + $0x158] sm:$0xf] %vm2601_vm7, %v4032_v59  ;;  %v4416_v35 = vpop.f32.mrb[72].mxu0 }
 0x376   : > { %v4035_v34 = vpack.c.bf16 %v4416_v35, %v4416_v35  ;;  %v3222_v28 = vpop.f32.mrb[73].mxu0 }
 0x377   : > { %v4034_v36 = vpack.c.bf16 %v3222_v28, %v3222_v28 }
 0x378   : > { %3936 = vst.msk [vmem:[%s6164_s18 + $0x164] sm:$0xf] %vm2601_vm7, %v4035_v34 }
 0x379   : > { %3935 = vst.msk [vmem:[%s6164_s18 + $0x160] sm:$0xf] %vm2601_vm7, %v4034_v36  ;;  %v4419_v37 = vpop.f32.mrb[74].mxu0 }
 0x37a   : > { %v4037_v42 = vpack.c.bf16 %v4419_v37, %v4419_v37  ;;  %v3232_v55 = vpop.f32.mrb[75].mxu0 }
 0x37b   : > { %v4036_v8 = vpack.c.bf16 %v3232_v55, %v3232_v55 }
 0x37c   : > { %3938 = vst.msk [vmem:[%s6164_s18 + $0x16c] sm:$0xf] %vm2601_vm7, %v4037_v42 }
 0x37d   : > { %3937 = vst.msk [vmem:[%s6164_s18 + $0x168] sm:$0xf] %vm2601_vm7, %v4036_v8  ;;  %v4422_v9 = vpop.f32.mrb[76].mxu0 }
 0x37e   : > { %v4039_v27 = vpack.c.bf16 %v4422_v9, %v4422_v9  ;;  %v3242_v38 = vpop.f32.mrb[77].mxu0 }
 0x37f   : > { %v4038_v44 = vpack.c.bf16 %v3242_v38, %v3242_v38 }
 0x380   : > { %3940 = vst.msk [vmem:[%s6164_s18 + $0x174] sm:$0xf] %vm2601_vm7, %v4039_v27 }
 0x381   : > { %3939 = vst.msk [vmem:[%s6164_s18 + $0x170] sm:$0xf] %vm2601_vm7, %v4038_v44  ;;  %v4425_v58 = vpop.f32.mrb[78].mxu0 }
 0x382   : > { %v4041_v5 = vpack.c.bf16 %v4425_v58, %v4425_v58  ;;  %v3252_v26 = vpop.f32.mrb[79].mxu0 }
 0x383   : > { %v4040_v18 = vpack.c.bf16 %v3252_v26, %v3252_v26 }
 0x384   : > { %3942 = vst.msk [vmem:[%s6164_s18 + $0x17c] sm:$0xf] %vm2601_vm7, %v4041_v5 }
 0x385   : > { %3941 = vst.msk [vmem:[%s6164_s18 + $0x178] sm:$0xf] %vm2601_vm7, %v4040_v18 }
 0x386 PF: > { %s19_s11 = sadd.s32 1, %s4793_s11   ;;  %s6425_s30 = smov %s4789_s10 }
 0x387   : > { %p16_p5 = scmp.ge.s32.totalorder %s19_s11, 4   ;;  %s6426_s10 = smov %s6428_s12 }
 0x389   :  { %18 = sbr.rel (!%p16_p5) target bundleno = 2 (0x2), region = 100 }

</bundles_post_ra>
